<compile_context>
chip_gen: v6e
topology: v6e:2x2x1
jax: 0.10.0
libtpu: 0.0.40
codegen_flags: <defaults>
</compile_context>

<pallas_src>
import functools

import jax
import jax.numpy as jnp
from jax.experimental import pallas as pl
from jax.experimental.pallas import tpu as pltpu


# ---------------------------------------------------------------------------
# Pallas kernel: fused im2col + (patches @ W) + bias, transposed lane-dense store
# ---------------------------------------------------------------------------
def _conv_kernel(x_ref, w_ref, b_ref, o_ref, *, H, W, Cout):
    # x_ref: (1, H+2, W+2, Cin)  padded NHWC tile for one image (all in VMEM)
    # w_ref: (9, Cin, PAD)       per-offset conv weights, output dim zero-padded to PAD
    # b_ref: (1, PAD)            bias, zero-padded to PAD
    # o_ref: (Cout, H*W)         transposed, lane-dense output tile
    HW = H * W
    PAD = w_ref.shape[-1]

    x = x_ref[...]          # (1, H+2, W+2, Cin)
    w = w_ref[...]          # (9, Cin, PAD)

    # Fused im2col: accumulate the 9 shifted-window matmuls on the MXU.
    acc = jnp.zeros((HW, PAD), jnp.float32)
    for kh in range(3):
        for kw in range(3):
            # (H, W, Cin) shifted window -> (H*W, Cin); lane dim (Cin) unchanged,
            # leading dims collapse into sublanes (layout-preserving reshape).
            sl = x[0, kh:kh + H, kw:kw + W, :].reshape(HW, -1)
            acc = acc + jnp.dot(sl, w[kh * 3 + kw],
                                preferred_element_type=jnp.float32)

    acc = acc + b_ref[...]                       # (HW, PAD) + (1, PAD)

    # Native (8,128)-aligned transpose -> lane-dense store of the first Cout rows.
    out_t = acc.T                                # (PAD, HW)
    o_ref[...] = out_t[:Cout, :].astype(o_ref.dtype)


# ---------------------------------------------------------------------------
# CNN forward: Conv2d(Cin, Cout, kernel_size=3, padding=1)
# ---------------------------------------------------------------------------
@jax.jit
def cnn_forward(x_nchw, weight, bias):
    """x_nchw: (N, Cin, H, W); weight: (Cout, Cin, 3, 3); bias: (Cout,)."""
    N, Cin, H, W = x_nchw.shape
    Cout = weight.shape[0]
    HW = H * W
    PAD = 128 * ((Cout + 127) // 128)            # lane-pad the output-channel dim

    # Lane-dense output tiling needs H*W % 128 == 0 when N > 1 (true for 16x16 maps).
    assert N == 1 or HW % 128 == 0, "H*W must be a multiple of 128 for N > 1"

    # Tiny wrapper glue (8 KiB input): NCHW -> padded NHWC.  The 9x im2col expansion
    # happens only inside VMEM.
    x_nhwc = jnp.transpose(x_nchw, (0, 2, 3, 1))                 # (N, H, W, Cin)
    x_pad = jnp.pad(x_nhwc, ((0, 0), (1, 1), (1, 1), (0, 0)))    # (N, H+2, W+2, Cin)

    # weight (Cout, Cin, kh, kw) -> (kh*kw, Cin, Cout) -> zero-pad Cout to PAD lanes
    w_k = jnp.transpose(weight, (2, 3, 1, 0)).reshape(9, Cin, Cout)
    w_k = jnp.pad(w_k, ((0, 0), (0, 0), (0, PAD - Cout)))        # (9, Cin, PAD)
    b_p = jnp.pad(bias, (0, PAD - Cout)).reshape(1, PAD)         # (1, PAD)

    kernel = functools.partial(_conv_kernel, H=H, W=W, Cout=Cout)

    out_t = pl.pallas_call(
        kernel,
        out_shape=jax.ShapeDtypeStruct((Cout, N * HW), x_nchw.dtype),
        grid_spec=pltpu.PrefetchScalarGridSpec(
            num_scalar_prefetch=0,
            grid=(N,),                                            # one step per image
            in_specs=[
                pl.BlockSpec((1, H + 2, W + 2, Cin), lambda n: (n, 0, 0, 0)),
                pl.BlockSpec((9, Cin, PAD), lambda n: (0, 0, 0)),  # resident weight
                pl.BlockSpec((1, PAD), lambda n: (0, 0)),          # resident bias
            ],
            out_specs=pl.BlockSpec((Cout, HW), lambda n: (0, n)),  # lane-dense tile
        ),
        compiler_params=pltpu.CompilerParams(
            dimension_semantics=("parallel",),    # shards across v7x's 2 TensorCores
        ),
    )(x_pad, w_k, b_p)

    # (Cout, N*H*W) -> (N, Cout, H, W): cheap leading-axis permute (tiled dims intact).
    return jnp.transpose(out_t.reshape(Cout, N, H, W), (1, 0, 2, 3))


# ---------------------------------------------------------------------------
# Deterministic parameter init (matches nn.Conv2d shapes; synthetic values)
# ---------------------------------------------------------------------------
def init_cnn_params(key, input_channels, output_channels):
    kw_, kb_ = jax.random.split(key)
    fan_in = input_channels * 3 * 3
    bound = 1.0 / (fan_in ** 0.5)
    weight = jax.random.uniform(
        kw_, (output_channels, input_channels, 3, 3),
        minval=-bound, maxval=bound, dtype=jnp.float32)
    bias = jax.random.uniform(
        kb_, (output_channels,), minval=-bound, maxval=bound, dtype=jnp.float32)
    return weight, bias


if __name__ == "__main__":
    key = jax.random.PRNGKey(0)
    k_x, k_p = jax.random.split(key)

    N, Cin, H, W = 2, 4, 16, 16
    Cout = 8

    x = jax.random.normal(k_x, (N, Cin, H, W), dtype=jnp.float32)
    weight, bias = init_cnn_params(k_p, Cin, Cout)

    out = cnn_forward(x, weight, bias)
    out = jax.block_until_ready(out)

    # correctness check against XLA's native conv (same semantics as nn.Conv2d)
    ref = jax.lax.conv_general_dilated(
        x, weight, window_strides=(1, 1), padding=((1, 1), (1, 1)),
        dimension_numbers=("NCHW", "OIHW", "NCHW"),
    ) + bias.reshape(1, Cout, 1, 1)
    assert out.shape == (N, Cout, H, W)
    assert jnp.allclose(out, ref, atol=1e-4, rtol=1e-4)

    print("KERNEL_OK")
</pallas_src>

<mosaic_0001>
module attributes {stable_mosaic.version = 11 : i64} {
  func.func @_conv_kernel(%arg0: i32, %arg1: memref<1x18x18x4xf32, #tpu.memory_space<vmem>>, %arg2: memref<9x4x128xf32, #tpu.memory_space<vmem>>, %arg3: memref<1x128xf32, #tpu.memory_space<vmem>>, %arg4: memref<8x256xf32, #tpu.memory_space<vmem>>) attributes {dimension_semantics = [#tpu.dimension_semantics<parallel>], iteration_bounds = array<i64: 2>, scalar_prefetch = 0 : i64, scratch_operands = 0 : i64, tpu.core_type = #tpu.core_type<tc>, window_params = [{transform_indices = @transform_0, window_bounds = array<i64: 1, 18, 18, 4>}, {pipeline_mode = #tpu.pipeline_mode<synchronous>, transform_indices = @transform_1, window_bounds = array<i64: 9, 4, 128>}, {pipeline_mode = #tpu.pipeline_mode<synchronous>, transform_indices = @transform_2, window_bounds = array<i64: 1, 128>}, {transform_indices = @transform_3, window_bounds = array<i64: 8, 256>}]} {
    %c0 = arith.constant 0 : index
    %c0_0 = arith.constant 0 : index
    %c0_1 = arith.constant 0 : index
    %c0_2 = arith.constant 0 : index
    %0 = vector.load %arg1[%c0, %c0_0, %c0_1, %c0_2] : memref<1x18x18x4xf32, #tpu.memory_space<vmem>>, vector<1x18x18x4xf32>
    %c0_3 = arith.constant 0 : index
    %c0_4 = arith.constant 0 : index
    %c0_5 = arith.constant 0 : index
    %1 = vector.load %arg2[%c0_3, %c0_4, %c0_5] : memref<9x4x128xf32, #tpu.memory_space<vmem>>, vector<9x4x128xf32>
    %cst = arith.constant 0.000000e+00 : f32
    %2 = vector.broadcast %cst : f32 to vector<256x128xf32>
    %3 = vector.extract_strided_slice %0 {offsets = [0, 0, 0, 0], sizes = [1, 16, 16, 4], strides = [1, 1, 1, 1]} : vector<1x18x18x4xf32> to vector<1x16x16x4xf32>
    %4 = vector.shape_cast %3 : vector<1x16x16x4xf32> to vector<16x16x4xf32>
    %5 = vector.shape_cast %4 : vector<16x16x4xf32> to vector<256x4xf32>
    %6 = vector.extract_strided_slice %1 {offsets = [0, 0, 0], sizes = [1, 4, 128], strides = [1, 1, 1]} : vector<9x4x128xf32> to vector<1x4x128xf32>
    %7 = vector.shape_cast %6 : vector<1x4x128xf32> to vector<4x128xf32>
    %cst_6 = arith.constant dense<0.000000e+00> : vector<256x128xf32>
    %8 = tpu.matmul %5, %7, %cst_6 {dimension_numbers = #tpu.dot_dimension_numbers<[1], [0], [0], [1], [0, 0, 1, 1], [], []>} : vector<256x4xf32>, vector<4x128xf32>, vector<256x128xf32> -> vector<256x128xf32>
    %9 = arith.addf %2, %8 : vector<256x128xf32>
    %10 = vector.extract_strided_slice %0 {offsets = [0, 0, 1, 0], sizes = [1, 16, 16, 4], strides = [1, 1, 1, 1]} : vector<1x18x18x4xf32> to vector<1x16x16x4xf32>
    %11 = vector.shape_cast %10 : vector<1x16x16x4xf32> to vector<16x16x4xf32>
    %12 = vector.shape_cast %11 : vector<16x16x4xf32> to vector<256x4xf32>
    %13 = vector.extract_strided_slice %1 {offsets = [1, 0, 0], sizes = [1, 4, 128], strides = [1, 1, 1]} : vector<9x4x128xf32> to vector<1x4x128xf32>
    %14 = vector.shape_cast %13 : vector<1x4x128xf32> to vector<4x128xf32>
    %cst_7 = arith.constant dense<0.000000e+00> : vector<256x128xf32>
    %15 = tpu.matmul %12, %14, %cst_7 {dimension_numbers = #tpu.dot_dimension_numbers<[1], [0], [0], [1], [0, 0, 1, 1], [], []>} : vector<256x4xf32>, vector<4x128xf32>, vector<256x128xf32> -> vector<256x128xf32>
    %16 = arith.addf %9, %15 : vector<256x128xf32>
    %17 = vector.extract_strided_slice %0 {offsets = [0, 0, 2, 0], sizes = [1, 16, 16, 4], strides = [1, 1, 1, 1]} : vector<1x18x18x4xf32> to vector<1x16x16x4xf32>
    %18 = vector.shape_cast %17 : vector<1x16x16x4xf32> to vector<16x16x4xf32>
    %19 = vector.shape_cast %18 : vector<16x16x4xf32> to vector<256x4xf32>
    %20 = vector.extract_strided_slice %1 {offsets = [2, 0, 0], sizes = [1, 4, 128], strides = [1, 1, 1]} : vector<9x4x128xf32> to vector<1x4x128xf32>
    %21 = vector.shape_cast %20 : vector<1x4x128xf32> to vector<4x128xf32>
    %cst_8 = arith.constant dense<0.000000e+00> : vector<256x128xf32>
    %22 = tpu.matmul %19, %21, %cst_8 {dimension_numbers = #tpu.dot_dimension_numbers<[1], [0], [0], [1], [0, 0, 1, 1], [], []>} : vector<256x4xf32>, vector<4x128xf32>, vector<256x128xf32> -> vector<256x128xf32>
    %23 = arith.addf %16, %22 : vector<256x128xf32>
    %24 = vector.extract_strided_slice %0 {offsets = [0, 1, 0, 0], sizes = [1, 16, 16, 4], strides = [1, 1, 1, 1]} : vector<1x18x18x4xf32> to vector<1x16x16x4xf32>
    %25 = vector.shape_cast %24 : vector<1x16x16x4xf32> to vector<16x16x4xf32>
    %26 = vector.shape_cast %25 : vector<16x16x4xf32> to vector<256x4xf32>
    %27 = vector.extract_strided_slice %1 {offsets = [3, 0, 0], sizes = [1, 4, 128], strides = [1, 1, 1]} : vector<9x4x128xf32> to vector<1x4x128xf32>
    %28 = vector.shape_cast %27 : vector<1x4x128xf32> to vector<4x128xf32>
    %cst_9 = arith.constant dense<0.000000e+00> : vector<256x128xf32>
    %29 = tpu.matmul %26, %28, %cst_9 {dimension_numbers = #tpu.dot_dimension_numbers<[1], [0], [0], [1], [0, 0, 1, 1], [], []>} : vector<256x4xf32>, vector<4x128xf32>, vector<256x128xf32> -> vector<256x128xf32>
    %30 = arith.addf %23, %29 : vector<256x128xf32>
    %31 = vector.extract_strided_slice %0 {offsets = [0, 1, 1, 0], sizes = [1, 16, 16, 4], strides = [1, 1, 1, 1]} : vector<1x18x18x4xf32> to vector<1x16x16x4xf32>
    %32 = vector.shape_cast %31 : vector<1x16x16x4xf32> to vector<16x16x4xf32>
    %33 = vector.shape_cast %32 : vector<16x16x4xf32> to vector<256x4xf32>
    %34 = vector.extract_strided_slice %1 {offsets = [4, 0, 0], sizes = [1, 4, 128], strides = [1, 1, 1]} : vector<9x4x128xf32> to vector<1x4x128xf32>
    %35 = vector.shape_cast %34 : vector<1x4x128xf32> to vector<4x128xf32>
    %cst_10 = arith.constant dense<0.000000e+00> : vector<256x128xf32>
    %36 = tpu.matmul %33, %35, %cst_10 {dimension_numbers = #tpu.dot_dimension_numbers<[1], [0], [0], [1], [0, 0, 1, 1], [], []>} : vector<256x4xf32>, vector<4x128xf32>, vector<256x128xf32> -> vector<256x128xf32>
    %37 = arith.addf %30, %36 : vector<256x128xf32>
    %38 = vector.extract_strided_slice %0 {offsets = [0, 1, 2, 0], sizes = [1, 16, 16, 4], strides = [1, 1, 1, 1]} : vector<1x18x18x4xf32> to vector<1x16x16x4xf32>
    %39 = vector.shape_cast %38 : vector<1x16x16x4xf32> to vector<16x16x4xf32>
    %40 = vector.shape_cast %39 : vector<16x16x4xf32> to vector<256x4xf32>
    %41 = vector.extract_strided_slice %1 {offsets = [5, 0, 0], sizes = [1, 4, 128], strides = [1, 1, 1]} : vector<9x4x128xf32> to vector<1x4x128xf32>
    %42 = vector.shape_cast %41 : vector<1x4x128xf32> to vector<4x128xf32>
    %cst_11 = arith.constant dense<0.000000e+00> : vector<256x128xf32>
    %43 = tpu.matmul %40, %42, %cst_11 {dimension_numbers = #tpu.dot_dimension_numbers<[1], [0], [0], [1], [0, 0, 1, 1], [], []>} : vector<256x4xf32>, vector<4x128xf32>, vector<256x128xf32> -> vector<256x128xf32>
    %44 = arith.addf %37, %43 : vector<256x128xf32>
    %45 = vector.extract_strided_slice %0 {offsets = [0, 2, 0, 0], sizes = [1, 16, 16, 4], strides = [1, 1, 1, 1]} : vector<1x18x18x4xf32> to vector<1x16x16x4xf32>
    %46 = vector.shape_cast %45 : vector<1x16x16x4xf32> to vector<16x16x4xf32>
    %47 = vector.shape_cast %46 : vector<16x16x4xf32> to vector<256x4xf32>
    %48 = vector.extract_strided_slice %1 {offsets = [6, 0, 0], sizes = [1, 4, 128], strides = [1, 1, 1]} : vector<9x4x128xf32> to vector<1x4x128xf32>
    %49 = vector.shape_cast %48 : vector<1x4x128xf32> to vector<4x128xf32>
    %cst_12 = arith.constant dense<0.000000e+00> : vector<256x128xf32>
    %50 = tpu.matmul %47, %49, %cst_12 {dimension_numbers = #tpu.dot_dimension_numbers<[1], [0], [0], [1], [0, 0, 1, 1], [], []>} : vector<256x4xf32>, vector<4x128xf32>, vector<256x128xf32> -> vector<256x128xf32>
    %51 = arith.addf %44, %50 : vector<256x128xf32>
    %52 = vector.extract_strided_slice %0 {offsets = [0, 2, 1, 0], sizes = [1, 16, 16, 4], strides = [1, 1, 1, 1]} : vector<1x18x18x4xf32> to vector<1x16x16x4xf32>
    %53 = vector.shape_cast %52 : vector<1x16x16x4xf32> to vector<16x16x4xf32>
    %54 = vector.shape_cast %53 : vector<16x16x4xf32> to vector<256x4xf32>
    %55 = vector.extract_strided_slice %1 {offsets = [7, 0, 0], sizes = [1, 4, 128], strides = [1, 1, 1]} : vector<9x4x128xf32> to vector<1x4x128xf32>
    %56 = vector.shape_cast %55 : vector<1x4x128xf32> to vector<4x128xf32>
    %cst_13 = arith.constant dense<0.000000e+00> : vector<256x128xf32>
    %57 = tpu.matmul %54, %56, %cst_13 {dimension_numbers = #tpu.dot_dimension_numbers<[1], [0], [0], [1], [0, 0, 1, 1], [], []>} : vector<256x4xf32>, vector<4x128xf32>, vector<256x128xf32> -> vector<256x128xf32>
    %58 = arith.addf %51, %57 : vector<256x128xf32>
    %59 = vector.extract_strided_slice %0 {offsets = [0, 2, 2, 0], sizes = [1, 16, 16, 4], strides = [1, 1, 1, 1]} : vector<1x18x18x4xf32> to vector<1x16x16x4xf32>
    %60 = vector.shape_cast %59 : vector<1x16x16x4xf32> to vector<16x16x4xf32>
    %61 = vector.shape_cast %60 : vector<16x16x4xf32> to vector<256x4xf32>
    %62 = vector.extract_strided_slice %1 {offsets = [8, 0, 0], sizes = [1, 4, 128], strides = [1, 1, 1]} : vector<9x4x128xf32> to vector<1x4x128xf32>
    %63 = vector.shape_cast %62 : vector<1x4x128xf32> to vector<4x128xf32>
    %cst_14 = arith.constant dense<0.000000e+00> : vector<256x128xf32>
    %64 = tpu.matmul %61, %63, %cst_14 {dimension_numbers = #tpu.dot_dimension_numbers<[1], [0], [0], [1], [0, 0, 1, 1], [], []>} : vector<256x4xf32>, vector<4x128xf32>, vector<256x128xf32> -> vector<256x128xf32>
    %65 = arith.addf %58, %64 : vector<256x128xf32>
    %c0_15 = arith.constant 0 : index
    %c0_16 = arith.constant 0 : index
    %66 = vector.load %arg3[%c0_15, %c0_16] : memref<1x128xf32, #tpu.memory_space<vmem>>, vector<1x128xf32>
    %67 = vector.broadcast %66 : vector<1x128xf32> to vector<256x128xf32>
    %68 = arith.addf %65, %67 : vector<256x128xf32>
    %69 = tpu.transpose %68, [1, 0] : vector<256x128xf32> -> vector<128x256xf32>
    %70 = vector.extract_strided_slice %69 {offsets = [0, 0], sizes = [8, 256], strides = [1, 1]} : vector<128x256xf32> to vector<8x256xf32>
    %c0_17 = arith.constant 0 : index
    %c0_18 = arith.constant 0 : index
    %71 = vector.load %arg4[%c0_17, %c0_18] : memref<8x256xf32, #tpu.memory_space<vmem>>, vector<8x256xf32>
    tpu.vector_store %arg4[%c0_17, %c0_18], %70 {strides = array<i32>} : memref<8x256xf32, #tpu.memory_space<vmem>>, vector<8x256xf32>,
    return
  }
  func.func @transform_0(%arg0: i32) -> (i32, i32, i32, i32) {
    %c0_i32 = arith.constant 0 : i32
    %c0_i32_0 = arith.constant 0 : i32
    %c0_i32_1 = arith.constant 0 : i32
    %c0_i32_2 = arith.constant 0 : i32
    return %arg0, %c0_i32, %c0_i32_0, %c0_i32_1 : i32, i32, i32, i32
  }
  func.func @transform_1(%arg0: i32) -> (i32, i32, i32) {
    %c0_i32 = arith.constant 0 : i32
    %c0_i32_0 = arith.constant 0 : i32
    %c0_i32_1 = arith.constant 0 : i32
    %c0_i32_2 = arith.constant 0 : i32
    return %c0_i32, %c0_i32_0, %c0_i32_1 : i32, i32, i32
  }
  func.func @transform_2(%arg0: i32) -> (i32, i32) {
    %c0_i32 = arith.constant 0 : i32
    %c0_i32_0 = arith.constant 0 : i32
    %c0_i32_1 = arith.constant 0 : i32
    return %c0_i32, %c0_i32_0 : i32, i32
  }
  func.func @transform_3(%arg0: i32) -> (i32, i32) {
    %c0_i32 = arith.constant 0 : i32
    %c0_i32_0 = arith.constant 0 : i32
    return %c0_i32, %arg0 : i32, i32
  }
}

</mosaic_0001>

<bundles_post_ra>
// kernel: cnn_forward.1
= control target key start
LH: loop header
LB: loop body
LE: loop exit
PB: predicated region body
PF: predicated region fallthrough
CT: control target
= control target key end

     0   :  { %s4220_s12 = smov 0   ;;  %s5803_s0 = inlined_call_operand.vmem [shape: f32[2,18,18,4], index: 0, kind: input, shape index: {}]   ;;  %s5804_s1 = inlined_call_operand.vmem [shape: f32[9,4,128], index: 1, kind: input, shape index: {}]   ;;  %s5805_s2 = inlined_call_operand.vmem [shape: f32[1,128], index: 2, kind: input, shape index: {}]   ;;  %s5806_s3 = inlined_call_operand.vmem [shape: f32[8,512], index: 3, kind: output, shape index: {}]  }
   0x1 LB: > { %s4226_s13 = sadd.s32 4294967295, %s4198_s12   ;;  %p3130_p0 = scmp.ge.s32.totalorder %s4198_s12, 1  ;;  %s4198_s12 = sphi %s4220_s12, %s13_s12  }
   0x2   : > { %p137_p1 = scmp.lt.s32.totalorder %s4198_s12, 3 }
   0x4   : > { %p138_p2 = pnand %p3130_p0, %p137_p1 }
   0x6   : > { %141 = sbr.rel (%p138_p2) target bundleno = 607 (0x25f), region = 32 }
   0xb   : > { %v227_v0 = vld [vmem:[%s5804_s1 + $0x4] sm:$0xf]  ;;  %vm429_vm0 = vcmask 1043456   ;;  %p161_p3 = scmp.lt.s32.totalorder %s4226_s13, 1  ;;  %v226_v1 = vld [vmem:[%s5804_s1] sm:$0xf] }
   0xc   : > { %4181 = vmatprep.subr.msk.mxu1 %vm429_vm0, %v227_v0  ;;  %3731 = vmatprep.subr.msk.mxu0 %vm429_vm0, %v227_v0  ;;  %v228_v2 = vld [vmem:[%s5804_s1 + $0x8] sm:$0xf]  ;;  %vm283_vm1 = vcmask 1046528   ;;  %vm364_vm2 = vcmask 31744   ;;  %v4293_v21 = vld [vmem:[%s5804_s1 + $0xc] sm:$0xf] }
   0xd   : > { %4182 = vmatpush3.msk.msra.mxu1 %vm429_vm0, %v227_v0  ;;  %3732 = vmatpush3.msk.msra.mxu0 %vm429_vm0, %v227_v0  ;;  %s162_s20 = scalar_select %p161_p3, %s4226_s13, 1  ;;  %v4311_v28 = vld [vmem:[%s5804_s1 + $0x10] sm:$0xf]  ;;  %vm950_vm3 = vcmask 1045504  }
   0xe   : > { %3781 = vmatprep.subr.msk.mxu1 %vm429_vm0, %v226_v1  ;;  %3831 = vmatprep.subr.msk.mxu0 %vm429_vm0, %v228_v2  ;;  %s3132_s14 = sshll.u32 %s4226_s13, 1 }
   0xf   : > { %s4183_s21 = smul.u32 432, %s162_s20  ;;  %p167_p4 = scmp.lt.s32.totalorder %s3132_s14, 3 }
  0x11   : > { %s4250_s24 = scalar_lea.vmem %s5803_s0, %s4183_s21  ;;  %s6018_s14 = smov (!%p167_p4, %s3132_s14), 3 }
  0x12   : > { %v4253_v3 = vld [vmem:[%s4250_s24] sm:$0xff]  ;;  %v4256_v4 = vld [vmem:[%s4250_s24 + $0x8] sm:$0xff]  ;;  %v4268_v10 = vld [vmem:[%s4250_s24 + $0x10] sm:$0x3]  ;;  %s3133_s15 = sshll.u32 %s6018_s14, 3 }
  0x13   : > { %v4259_v5 = vld [vmem:[%s4250_s24 + $0xc0] sm:$0xff]  ;;  %v284_v6 = vrot.slane %v4253_v3, 1  ;;  %v285_v7 = vrot.slane %v4256_v4, 1  ;;  %v4264_v8 = vld [vmem:[%s4250_s24 + $0xc8] sm:$0xff]  ;;  %v287_v12 = vrot.slane %v4268_v10, 1  ;;  %v4276_v14 = vld [vmem:[%s4250_s24 + $0x18] sm:$0xff]  ;;  %s170_s18 = scalar_lea.vmem %s5806_s3, %s3133_s15 }
  0x14   : > { %v324_v9 = vrot.slane %v4259_v5, 1  ;;  %v325_v11 = vrot.slane %v4264_v8, 1  ;;  %v4273_v13 = vld [vmem:[%s4250_s24 + $0xd0] sm:$0x3]  ;;  %v4281_v17 = vld [vmem:[%s4250_s24 + $0x20] sm:$0xff]  ;;  %v289_v18 = vrot.slane %v4276_v14, 1 }
  0x15   : > { %v286_v15 = vsel %vm283_vm1, %v284_v6, %v285_v7  ;;  %v327_v16 = vrot.slane %v4273_v13, 1  ;;  %v4285_v19 = vld [vmem:[%s4250_s24 + $0xd8] sm:$0xff]  ;;  %v4288_v20 = vld [vmem:[%s4250_s24 + $0xe0] sm:$0xff]  ;;  %v288_v23 = vsel %vm283_vm1, %v285_v7, %v287_v12  ;;  %v290_v24 = vrot.slane %v4281_v17, 1  ;;  %v4303_v26 = vld [vmem:[%s4250_s24 + $0x28] sm:$0x3] }
  0x16   : > { %3733 = vmatprep.mubr.msk.f32.mxu0 %vm364_vm2, %v286_v15  ;;  %v4297_v22 = vsel %vm283_vm1, %v324_v9, %v325_v11  ;;  %v329_v25 = vrot.slane %v4285_v19, 1  ;;  %v4306_v27 = vld [vmem:[%s4250_s24 + $0xe8] sm:$0x3]  ;;  %v330_v30 = vrot.slane %v4288_v20, 1  ;;  %v292_v31 = vrot.slane %v4303_v26, 1  ;;  %v4323_v33 = vld [vmem:[%s4250_s24 + $0x30] sm:$0xff] }
  0x17   : > { %5889 = vst [vmem:[#allocation2_spill] sm:$0xff] %v4297_v22  ;;  %3757 = vmatprep.mubr.msk.f32.mxu1 %vm364_vm2, %v4297_v22  ;;  %3734 = vmatmul.mubr.msk.f32.vlgmr.msra.gmra.mxu0 %vm364_vm2, %v288_v23  ;;  %v4317_v29 = vsel %vm283_vm1, %v325_v11, %v327_v16  ;;  %v332_v32 = vrot.slane %v4306_v27, 1  ;;  %v4326_v34 = vld [vmem:[%s4250_s24 + $0x38] sm:$0xff]  ;;  %v4329_v35 = vld [vmem:[%s4250_s24 + $0xf0] sm:$0xff]  ;;  %v4335_v36 = vsel %vm283_vm1, %v289_v18, %v290_v24  ;;  %v294_v37 = vrot.slane %v4323_v33, 1  ;;  %v4363_v47 = vld [vmem:[%s4250_s24 + $0x48] sm:$0xff] }
  0x18   : > { %5890 = vst [vmem:[#allocation3_spill] sm:$0xff] %v4317_v29  ;;  %3758 = vmatmul.mubr.msk.f32.vlgmr.msra.gmra.mxu1 %vm364_vm2, %v4317_v29  ;;  %3832 = vmatpush3.msk.msra.mxu0 %vm429_vm0, %v228_v2  ;;  %5891 = vst [vmem:[#allocation4_spill] sm:$0xff] %v4335_v36  ;;  %v295_v38 = vrot.slane %v4326_v34, 1  ;;  %v4340_v39 = vld [vmem:[%s4250_s24 + $0xf8] sm:$0xff]  ;;  %v334_v40 = vrot.slane %v4329_v35, 1  ;;  %v4350_v42 = vsel %vm283_vm1, %v329_v25, %v330_v30  ;;  %v4366_v48 = vld [vmem:[%s4250_s24 + $0x50] sm:$0xff] }
  0x19   : > { %v4344_v41 = vld [vmem:[%s4250_s24 + $0x40] sm:$0x3]  ;;  %3782 = vmatpush3.msk.msra.mxu1 %vm429_vm0, %v226_v1  ;;  %3736 = vmatprep.mubr.msk.f32.mxu0 %vm364_vm2, %v4335_v36  ;;  %5892 = vst [vmem:[#allocation5_spill] sm:$0xff] %v4350_v42  ;;  %v4353_v43 = vsel %vm283_vm1, %v290_v24, %v292_v31  ;;  %v4356_v44 = vsel %vm283_vm1, %v330_v30, %v332_v32  ;;  %v335_v45 = vrot.slane %v4340_v39, 1  ;;  %v299_v52 = vrot.slane %v4363_v47, 1  ;;  %v4377_v53 = vld [vmem:[%s4250_s24 + $0x108] sm:$0xff] }
  0x1a   : > { %5893 = vst [vmem:[#allocation6_spill] sm:$0xff] %v4353_v43  ;;  %5894 = vst [vmem:[#allocation7_spill] sm:$0xff] %v4356_v44  ;;  %v4360_v46 = vld [vmem:[%s4250_s24 + $0x100] sm:$0x3]  ;;  %3760 = vmatprep.mubr.msk.f32.mxu1 %vm364_vm2, %v4350_v42  ;;  %v4371_v49 = vsel %vm283_vm1, %v294_v37, %v295_v38  ;;  %v297_v50 = vrot.slane %v4344_v41, 1  ;;  %v4380_v54 = vld [vmem:[%s4250_s24 + $0x110] sm:$0xff]  ;;  %3881 = vmatprep.subr.msk.mxu1 %vm429_vm0, %v4293_v21 }
  0x1b   : > { %5895 = vst [vmem:[#allocation8_spill] sm:$0xff] %v4371_v49  ;;  %v337_v51 = vrot.slane %v4360_v46, 1  ;;  %v4383_v55 = vld [vmem:[%s4250_s24 + $0x60] sm:$0xff]  ;;  %3737 = vmatmul.mubr.msk.f32.gmra.mxu0 %vm364_vm2, %v4353_v43  ;;  %v4390_v56 = vsel %vm283_vm1, %v334_v40, %v335_v45  ;;  %v300_v57 = vrot.slane %v4366_v48, 1  ;;  %v339_v58 = vrot.slane %v4377_v53, 1  ;;  %v4399_v61 = vld [vmem:[%s4250_s24 + $0x68] sm:$0xff]  ;;  %3931 = vmatprep.subr.msk.mxu0 %vm429_vm0, %v4311_v28 }
  0x1c   : > { %5896 = vst [vmem:[#allocation9_spill] sm:$0xff] %v4390_v56  ;;  %v340_v59 = vrot.slane %v4380_v54, 1  ;;  %v4396_v60 = vld [vmem:[%s4250_s24 + $0x58] sm:$0x3]  ;;  %3761 = vmatmul.mubr.msk.f32.gmra.mxu1 %vm364_vm2, %v4356_v44  ;;  %3739 = vmatprep.mubr.msk.f32.mxu0 %vm364_vm2, %v4371_v49  ;;  %v4408_v62 = vsel %vm283_vm1, %v295_v38, %v297_v50  ;;  %v304_v1 = vrot.slane %v4383_v55, 1  ;;  %v4416_v2 = vld [vmem:[%s4250_s24 + $0x120] sm:$0xff] }
  0x1d   : > { %5897 = vst [vmem:[#allocation10_spill] sm:$0xff] %v4408_v62  ;;  %v302_v63 = vrot.slane %v4396_v60, 1  ;;  %v4412_v0 = vld [vmem:[%s4250_s24 + $0x118] sm:$0x3]  ;;  %v4419_v6 = vld [vmem:[%s4250_s24 + $0x128] sm:$0xff]  ;;  %3763 = vmatprep.mubr.msk.f32.mxu1 %vm364_vm2, %v4390_v56  ;;  %v4424_v7 = vsel %vm283_vm1, %v335_v45, %v337_v51  ;;  %v4427_v9 = vsel %vm283_vm1, %v299_v52, %v300_v57  ;;  %v305_v12 = vrot.slane %v4399_v61, 1 }
  0x1e   : > { %5898 = vst [vmem:[#allocation11_spill] sm:$0xff] %v4424_v7  ;;  %5899 = vst [vmem:[#allocation12_spill] sm:$0xff] %v4427_v9  ;;  %v342_v11 = vrot.slane %v4412_v0, 1  ;;  %v4432_v15 = vld [vmem:[%s4250_s24 + $0x70] sm:$0x3]  ;;  %v4438_v18 = vsel %vm283_vm1, %v339_v58, %v340_v59  ;;  %v344_v23 = vrot.slane %v4416_v2, 1 }
  0x1f   : > { %v4435_v16 = vld [vmem:[%s4250_s24 + $0x130] sm:$0x3]  ;;  %5900 = vst [vmem:[#allocation13_spill] sm:$0xff] %v4438_v18  ;;  %v345_v24 = vrot.slane %v4419_v6, 1  ;;  %v4443_v25 = vld [vmem:[%s4250_s24 + $0x78] sm:$0xff]  ;;  %v4446_v30 = vld [vmem:[%s4250_s24 + $0x80] sm:$0xff]  ;;  %3740 = vmatmul.mubr.msk.f32.gmra.mxu0 %vm364_vm2, %v4408_v62  ;;  %v4461_v37 = vsel %vm283_vm1, %v300_v57, %v302_v63  ;;  %v4471_v50 = vsel %vm283_vm1, %v304_v1, %v305_v12 }
  0x20   : > { %v4451_v31 = vld [vmem:[%s4250_s24 + $0x138] sm:$0xff]  ;;  %v4454_v32 = vld [vmem:[%s4250_s24 + $0x140] sm:$0xff]  ;;  %3764 = vmatmul.mubr.msk.f32.gmra.mxu1 %vm364_vm2, %v4424_v7  ;;  %3742 = vmatprep.mubr.msk.f32.mxu0 %vm364_vm2, %v4427_v9  ;;  %5901 = vst [vmem:[#allocation14_spill] sm:$0xff] %v4461_v37  ;;  %v307_v38 = vrot.slane %v4432_v15, 1  ;;  %v347_v40 = vrot.slane %v4435_v16, 1  ;;  %v4468_v45 = vsel %vm283_vm1, %v340_v59, %v342_v11  ;;  %5903 = vst [vmem:[#allocation16_spill] sm:$0xff] %v4471_v50 }
  0x21   : > { %3766 = vmatprep.mubr.msk.f32.mxu1 %vm364_vm2, %v4438_v18  ;;  %5902 = vst [vmem:[#allocation15_spill] sm:$0xff] %v4468_v45  ;;  %v309_v51 = vrot.slane %v4443_v25, 1  ;;  %v310_v52 = vrot.slane %v4446_v30, 1  ;;  %v4476_v57 = vld [vmem:[%s4250_s24 + $0x88] sm:$0x3]  ;;  %v4482_v63 = vsel %vm283_vm1, %v344_v23, %v345_v24  ;;  %v349_v7 = vrot.slane %v4451_v31, 1 }
  0x22   : > { %v4479_v58 = vld [vmem:[%s4250_s24 + $0x148] sm:$0x3]  ;;  %5904 = vst [vmem:[#allocation17_spill] sm:$0xff] %v4482_v63  ;;  %v350_v18 = vrot.slane %v4454_v32, 1  ;;  %v4487_v59 = vld [vmem:[%s4250_s24 + $0x90] sm:$0xff]  ;;  %v4490_v1 = vld [vmem:[%s4250_s24 + $0x98] sm:$0xff]  ;;  %v4505_v23 = vsel %vm283_vm1, %v305_v12, %v307_v38  ;;  %v4512_v29 = vsel %vm283_vm1, %v345_v24, %v347_v40 }
  0x23   : > { %3743 = vmatmul.mubr.msk.f32.gmra.mxu0 %vm364_vm2, %v4461_v37  ;;  %v4495_v11 = vld [vmem:[%s4250_s24 + $0x150] sm:$0xff]  ;;  %v4498_v56 = vld [vmem:[%s4250_s24 + $0x158] sm:$0xff]  ;;  %5906 = vst [vmem:[#allocation19_spill] sm:$0xff] %v4505_v23  ;;  %v312_v44 = vrot.slane %v4476_v57, 1  ;;  %v352_v42 = vrot.slane %v4479_v58, 1  ;;  %5907 = vst [vmem:[#allocation20_spill] sm:$0xff] %v4512_v29 }
  0x24   : > { %5905 = vst [vmem:[#allocation18_spill] sm:$0xff] %v4498_v56  ;;  %3767 = vmatmul.mubr.msk.f32.gmra.mxu1 %vm364_vm2, %v4468_v45  ;;  %3745 = vmatprep.mubr.msk.f32.mxu0 %vm364_vm2, %v4471_v50  ;;  %v4515_v45 = vsel %vm283_vm1, %v309_v51, %v310_v52  ;;  %v314_v22 = vrot.slane %v4487_v59, 1  ;;  %v315_v12 = vrot.slane %v4490_v1, 1  ;;  %v4520_v38 = vld [vmem:[%s4250_s24 + $0xa0] sm:$0x3]  ;;  %v4523_v50 = vsel %vm283_vm1, %v349_v7, %v350_v18  ;;  %v4531_v24 = vld [vmem:[%s4250_s24 + $0xa8] sm:$0xff] }
  0x25   : > { %3769 = vmatprep.mubr.msk.f32.mxu1 %vm364_vm2, %v4482_v63  ;;  %5908 = vst [vmem:[#allocation21_spill] sm:$0xff] %v4515_v45  ;;  %5909 = vst [vmem:[#allocation22_spill] sm:$0xff] %v4523_v50  ;;  %v354_v37 = vrot.slane %v4495_v11, 1  ;;  %v355_v9 = vrot.slane %v4498_v56, 1  ;;  %v4528_v63 = vld [vmem:[%s4250_s24 + $0x160] sm:$0x3]  ;;  %v4549_v7 = vsel %vm283_vm1, %v310_v52, %v312_v44  ;;  %v4552_v49 = vsel %vm283_vm1, %v350_v18, %v352_v42 }
  0x26   : > { %v4534_v40 = vld [vmem:[%s4250_s24 + $0xb0] sm:$0xff]  ;;  %v4539_v51 = vld [vmem:[%s4250_s24 + $0x168] sm:$0xff]  ;;  %5911 = vst [vmem:[#allocation24_spill] sm:$0xff] %v4549_v7  ;;  %5912 = vst [vmem:[#allocation25_spill] sm:$0xff] %v4552_v49  ;;  %v317_v43 = vrot.slane %v4520_v38, 1  ;;  %v357_v36 = vrot.slane %v4528_v63, 1 }
  0x27   : > { %3746 = vmatmul.mubr.msk.f32.gmra.mxu0 %vm364_vm2, %v4505_v23  ;;  %v4542_v62 = vld [vmem:[%s4250_s24 + $0x170] sm:$0xff]  ;;  %v4558_v23 = vsel %vm283_vm1, %v314_v22, %v315_v12  ;;  %v4564_v56 = vld [vmem:[%s4250_s24 + $0xb8] sm:$0x3]  ;;  %v4567_v44 = vsel %vm283_vm1, %v354_v37, %v355_v9  ;;  %v359_v42 = vrot.slane %v4539_v51, 1 }
  0x28   : > { %5910 = vst [vmem:[#allocation23_spill] sm:$0xff] %v4542_v62  ;;  %3770 = vmatmul.mubr.msk.f32.gmra.mxu1 %vm364_vm2, %v4512_v29  ;;  %3748 = vmatprep.mubr.msk.f32.mxu0 %vm364_vm2, %v4515_v45  ;;  %5913 = vst [vmem:[#allocation26_spill] sm:$0xff] %v4558_v23  ;;  %v319_v29 = vrot.slane %v4531_v24, 1  ;;  %v320_v45 = vrot.slane %v4534_v40, 1  ;;  %v360_v18 = vrot.slane %v4542_v62, 1  ;;  %v4581_v22 = vsel %vm283_vm1, %v315_v12, %v317_v43 }
  0x29   : > { %3772 = vmatprep.mubr.msk.f32.mxu1 %vm364_vm2, %v4523_v50  ;;  %5914 = vst [vmem:[#allocation27_spill] sm:$0xff] %v4567_v44  ;;  %v4572_v52 = vld [vmem:[%s4250_s24 + $0x178] sm:$0x3]  ;;  %5915 = vst [vmem:[#allocation28_spill] sm:$0xff] %v4581_v22  ;;  %v322_v37 = vrot.slane %v4564_v56, 1  ;;  %v951_v50 = vrot.slane %v4253_v3, 2  ;;  %v4588_v62 = vsel %vm283_vm1, %v355_v9, %v357_v36 }
  0x2a   : > { %5916 = vst [vmem:[#allocation29_spill] sm:$0xff] %v4588_v62  ;;  %v4596_v43 = vsel %vm283_vm1, %v359_v42, %v360_v18  ;;  %v954_v12 = vrot.slane %v4268_v10, 2  ;;  %v956_v10 = vrot.slane %v4276_v14, 2  ;;  %v957_v42 = vrot.slane %v4281_v17, 2 }
  0x2b   : > { %3749 = vmatmul.mubr.msk.f32.gmra.mxu0 %vm364_vm2, %v4549_v7  ;;  %v4591_v7 = vsel %vm283_vm1, %v319_v29, %v320_v45  ;;  %5918 = vst [vmem:[#allocation31_spill] sm:$0xff] %v4596_v43  ;;  %v4606_v29 = vsel %vm283_vm1, %v320_v45, %v322_v37  ;;  %v959_v37 = vrot.slane %v4303_v26, 2  ;;  %v964_v26 = vrot.slane %v4344_v41, 2 }
  0x2c   : > { %3773 = vmatmul.mubr.msk.f32.gmra.mxu1 %vm364_vm2, %v4552_v49  ;;  %3751 = vmatprep.mubr.msk.f32.mxu0 %vm364_vm2, %v4558_v23  ;;  %5917 = vst [vmem:[#allocation30_spill] sm:$0xff] %v4591_v7  ;;  %v362_v49 = vrot.slane %v4572_v52, 1  ;;  %v952_v23 = vrot.slane %v4256_v4, 2  ;;  %5919 = vst [vmem:[#allocation32_spill] sm:$0xff] %v4606_v29  ;;  %v969_v41 = vrot.slane %v4396_v60, 2 }
  0x2d   : > { %3775 = vmatprep.mubr.msk.f32.mxu1 %vm364_vm2, %v4567_v44 }
  0x2e   : > { %v4611_v36 = vsel %vm283_vm1, %v360_v18, %v362_v49  ;;  %v953_v9 = vsel %vm950_vm3, %v951_v50, %v952_v23  ;;  %v955_v45 = vsel %vm950_vm3, %v952_v23, %v954_v12  ;;  %v961_v49 = vrot.slane %v4323_v33, 2  ;;  %v4647_v23 = vld [vmem:[%s5804_s1 + $0x18] sm:$0xf] }
  0x2f   : > { %3752 = vmatmul.mubr.msk.f32.gmra.mxu0 %vm364_vm2, %v4581_v22  ;;  %5920 = vst [vmem:[#allocation33_spill] sm:$0xff] %v4611_v36  ;;  %v962_v50 = vrot.slane %v4326_v34, 2  ;;  %v4629_v18 = vsel %vm950_vm3, %v956_v10, %v957_v42  ;;  %v967_v12 = vrot.slane %v4366_v48, 2 }
  0x30   : > { %3776 = vmatmul.mubr.msk.f32.gmra.mxu1 %vm364_vm2, %v4588_v62  ;;  %3754 = vmatprep.mubr.msk.f32.mxu0 %vm364_vm2, %v4591_v7 }
  0x31   : > { %3778 = vmatprep.mubr.msk.f32.mxu1 %vm364_vm2, %v4596_v43  ;;  %v4688_v60 = vsel %vm950_vm3, %v967_v12, %v969_v41  ;;  %v981_v41 = vrot.slane %v4487_v59, 2 }
  0x33   : > { %3755 = vmatmul.mubr.msk.f32.gmra.mxu0 %vm364_vm2, %v4606_v29 }
  0x34   : > { %3779 = vmatmul.mubr.msk.f32.gmra.mxu1 %vm364_vm2, %v4611_v36  ;;  %3833 = vmatprep.mubr.msk.f32.mxu0 %vm364_vm2, %v953_v9  ;;  %v4634_v9 = vld [vmem:[%s5804_s1 + $0x14] sm:$0xf] }
  0x35   : > { %3783 = vmatprep.mubr.msk.f32.mxu1 %vm364_vm2, %v4253_v3  ;;  %v4641_v3 = vsel %vm950_vm3, %v957_v42, %v959_v37  ;;  %v971_v42 = vrot.slane %v4383_v55, 2  ;;  %v974_v37 = vrot.slane %v4432_v15, 2 }
  0x37   : > { %3834 = vmatmul.mubr.msk.f32.vlgmr.msra.gmra.mxu0 %vm364_vm2, %v955_v45  ;;  %v972_v45 = vrot.slane %v4399_v61, 2 }
  0x38   : > { %3784 = vmatmul.mubr.msk.f32.vlgmr.msra.gmra.mxu1 %vm364_vm2, %v4256_v4  ;;  %3932 = vmatpush3.msk.msra.mxu0 %vm429_vm0, %v4311_v28  ;;  %v4654_v4 = vsel %vm950_vm3, %v961_v49, %v962_v50  ;;  %v966_v28 = vrot.slane %v4363_v47, 2 }
  0x39   : > { %3882 = vmatpush3.msk.msra.mxu1 %vm429_vm0, %v4293_v21  ;;  %3786 = vmatprep.mubr.msk.f32.mxu1 %vm364_vm2, %v4276_v14  ;;  %v4671_v21 = vsel %vm950_vm3, %v962_v50, %v964_v26  ;;  %v4694_v49 = vsel %vm950_vm3, %v971_v42, %v972_v45  ;;  %v976_v50 = vrot.slane %v4443_v25, 2  ;;  %v977_v26 = vrot.slane %v4446_v30, 2 }
  0x3a   : > { %3836 = vmatprep.mubr.msk.f32.mxu0 %vm364_vm2, %v4629_v18  ;;  %3981 = vmatprep.subr.msk.mxu1 %vm429_vm0, %v4634_v9  ;;  %v4677_v10 = vsel %vm950_vm3, %v966_v28, %v967_v12  ;;  %v4705_v15 = vsel %vm950_vm3, %v972_v45, %v974_v37  ;;  %v979_v28 = vrot.slane %v4476_v57, 2  ;;  %v982_v42 = vrot.slane %v4490_v1, 2 }
  0x3b   : > { %3837 = vmatmul.mubr.msk.f32.gmra.mxu0 %vm364_vm2, %v4641_v3  ;;  %4031 = vmatprep.subr.msk.mxu0 %vm429_vm0, %v4647_v23  ;;  %5921 = vst [vmem:[#allocation34_spill] sm:$0xff] %v4705_v15  ;;  %v4711_v12 = vsel %vm950_vm3, %v976_v50, %v977_v26  ;;  %v984_v45 = vrot.slane %v4520_v38, 2  ;;  %v986_v50 = vrot.slane %v4531_v24, 2 }
  0x3c   : > { %3787 = vmatmul.mubr.msk.f32.gmra.mxu1 %vm364_vm2, %v4281_v17  ;;  %3839 = vmatprep.mubr.msk.f32.mxu0 %vm364_vm2, %v4654_v4  ;;  %v4722_v57 = vsel %vm950_vm3, %v977_v26, %v979_v28  ;;  %v4728_v37 = vsel %vm950_vm3, %v981_v41, %v982_v42  ;;  %v989_v26 = vrot.slane %v4564_v56, 2  ;;  %v991_v41 = vrot.slane %v4259_v5, 2 }
  0x3d   : > { %3789 = vmatprep.mubr.msk.f32.mxu1 %vm364_vm2, %v4323_v33  ;;  %5922 = vst [vmem:[#allocation35_spill] sm:$0xff] %v4722_v57  ;;  %v4739_v38 = vsel %vm950_vm3, %v982_v42, %v984_v45  ;;  %v994_v42 = vrot.slane %v4273_v13, 2 }
  0x3e   : > { %5923 = vst [vmem:[#allocation36_spill] sm:$0xff] %v4739_v38 }
  0x3f   : > { %3840 = vmatmul.mubr.msk.f32.gmra.mxu0 %vm364_vm2, %v4671_v21 }
  0x40   : > { %3790 = vmatmul.mubr.msk.f32.gmra.mxu1 %vm364_vm2, %v4326_v34  ;;  %3842 = vmatprep.mubr.msk.f32.mxu0 %vm364_vm2, %v4677_v10 }
  0x41   : > { %3792 = vmatprep.mubr.msk.f32.mxu1 %vm364_vm2, %v4363_v47 }
  0x43   : > { %3843 = vmatmul.mubr.msk.f32.gmra.mxu0 %vm364_vm2, %v4688_v60 }
  0x44   : > { %3793 = vmatmul.mubr.msk.f32.gmra.mxu1 %vm364_vm2, %v4366_v48  ;;  %3845 = vmatprep.mubr.msk.f32.mxu0 %vm364_vm2, %v4694_v49 }
  0x45   : > { %3795 = vmatprep.mubr.msk.f32.mxu1 %vm364_vm2, %v4383_v55 }
  0x47   : > { %3846 = vmatmul.mubr.msk.f32.gmra.mxu0 %vm364_vm2, %v4705_v15  ;;  %v987_v15 = vrot.slane %v4534_v40, 2 }
  0x48   : > { %3796 = vmatmul.mubr.msk.f32.gmra.mxu1 %vm364_vm2, %v4399_v61  ;;  %3848 = vmatprep.mubr.msk.f32.mxu0 %vm364_vm2, %v4711_v12 }
  0x49   : > { %3798 = vmatprep.mubr.msk.f32.mxu1 %vm364_vm2, %v4443_v25  ;;  %v4745_v28 = vsel %vm950_vm3, %v986_v50, %v987_v15  ;;  %v4756_v56 = vsel %vm950_vm3, %v987_v15, %v989_v26  ;;  %v996_v50 = vrot.slane %v4285_v19, 2  ;;  %v999_v15 = vrot.slane %v4306_v27, 2 }
  0x4a   : > { %5924 = vst [vmem:[#allocation37_spill] sm:$0xff] %v4756_v56 }
  0x4b   : > { %3849 = vmatmul.mubr.msk.f32.gmra.mxu0 %vm364_vm2, %v4722_v57  ;;  %v992_v57 = vrot.slane %v4264_v8, 2 }
  0x4c   : > { %3799 = vmatmul.mubr.msk.f32.gmra.mxu1 %vm364_vm2, %v4446_v30  ;;  %3851 = vmatprep.mubr.msk.f32.mxu0 %vm364_vm2, %v4728_v37 }
  0x4d   : > { %3801 = vmatprep.mubr.msk.f32.mxu1 %vm364_vm2, %v4487_v59  ;;  %v4762_v45 = vsel %vm950_vm3, %v991_v41, %v992_v57  ;;  %v4773_v13 = vsel %vm950_vm3, %v992_v57, %v994_v42  ;;  %v1001_v41 = vrot.slane %v4329_v35, 2  ;;  %v1004_v57 = vrot.slane %v4360_v46, 2 }
  0x4e   : > { %5925 = vst [vmem:[#allocation38_spill] sm:$0xff] %v4773_v13 }
  0x4f   : > { %3852 = vmatmul.mubr.msk.f32.gmra.mxu0 %vm364_vm2, %v4739_v38  ;;  %v997_v38 = vrot.slane %v4288_v20, 2 }
  0x50   : > { %3802 = vmatmul.mubr.msk.f32.gmra.mxu1 %vm364_vm2, %v4490_v1  ;;  %3854 = vmatprep.mubr.msk.f32.mxu0 %vm364_vm2, %v4745_v28 }
  0x51   : > { %3804 = vmatprep.mubr.msk.f32.mxu1 %vm364_vm2, %v4531_v24  ;;  %v4779_v26 = vsel %vm950_vm3, %v996_v50, %v997_v38  ;;  %v4790_v27 = vsel %vm950_vm3, %v997_v38, %v999_v15  ;;  %v1006_v50 = vrot.slane %v4377_v53, 2  ;;  %v1009_v38 = vrot.slane %v4412_v0, 2 }
  0x52   : > { %5926 = vst [vmem:[#allocation39_spill] sm:$0xff] %v4790_v27 }
  0x53   : > { %3855 = vmatmul.mubr.msk.f32.gmra.mxu0 %vm364_vm2, %v4756_v56  ;;  %v1002_v56 = vrot.slane %v4340_v39, 2 }
  0x54   : > { %3805 = vmatmul.mubr.msk.f32.gmra.mxu1 %vm364_vm2, %v4534_v40  ;;  %3857 = vmatprep.mubr.msk.f32.mxu0 %vm364_vm2, %v4762_v45 }
  0x55   : > { %3807 = vmatprep.mubr.msk.f32.mxu1 %vm364_vm2, %v4259_v5  ;;  %v4796_v42 = vsel %vm950_vm3, %v1001_v41, %v1002_v56  ;;  %v4807_v46 = vsel %vm950_vm3, %v1002_v56, %v1004_v57  ;;  %v1011_v41 = vrot.slane %v4416_v2, 2  ;;  %v1014_v56 = vrot.slane %v4435_v16, 2 }
  0x56   : > { %5927 = vst [vmem:[#allocation40_spill] sm:$0xff] %v4807_v46 }
  0x57   : > { %3858 = vmatmul.mubr.msk.f32.gmra.mxu0 %vm364_vm2, %v4773_v13  ;;  %v1007_v13 = vrot.slane %v4380_v54, 2 }
  0x58   : > { %3808 = vmatmul.mubr.msk.f32.gmra.mxu1 %vm364_vm2, %v4264_v8  ;;  %3860 = vmatprep.mubr.msk.f32.mxu0 %vm364_vm2, %v4779_v26 }
  0x59   : > { %3810 = vmatprep.mubr.msk.f32.mxu1 %vm364_vm2, %v4285_v19  ;;  %v4813_v15 = vsel %vm950_vm3, %v1006_v50, %v1007_v13  ;;  %v4824_v0 = vsel %vm950_vm3, %v1007_v13, %v1009_v38  ;;  %v1016_v50 = vrot.slane %v4451_v31, 2  ;;  %v1019_v13 = vrot.slane %v4479_v58, 2 }
  0x5a   : > { %5928 = vst [vmem:[#allocation41_spill] sm:$0xff] %v4813_v15  ;;  %5929 = vst [vmem:[#allocation42_spill] sm:$0xff] %v4824_v0 }
  0x5b   : > { %3861 = vmatmul.mubr.msk.f32.gmra.mxu0 %vm364_vm2, %v4790_v27  ;;  %v1012_v27 = vrot.slane %v4419_v6, 2 }
  0x5c   : > { %3811 = vmatmul.mubr.msk.f32.gmra.mxu1 %vm364_vm2, %v4288_v20  ;;  %3863 = vmatprep.mubr.msk.f32.mxu0 %vm364_vm2, %v4796_v42 }
  0x5d   : > { %3813 = vmatprep.mubr.msk.f32.mxu1 %vm364_vm2, %v4329_v35  ;;  %v4830_v57 = vsel %vm950_vm3, %v1011_v41, %v1012_v27  ;;  %v4841_v16 = vsel %vm950_vm3, %v1012_v27, %v1014_v56  ;;  %v1021_v41 = vrot.slane %v4495_v11, 2  ;;  %v1024_v27 = vrot.slane %v4528_v63, 2 }
  0x5e   : > { %5930 = vst [vmem:[#allocation43_spill] sm:$0xff] %v4830_v57  ;;  %5931 = vst [vmem:[#allocation44_spill] sm:$0xff] %v4841_v16 }
  0x5f   : > { %3864 = vmatmul.mubr.msk.f32.gmra.mxu0 %vm364_vm2, %v4807_v46  ;;  %v1017_v46 = vrot.slane %v4454_v32, 2 }
  0x60   : > { %3814 = vmatmul.mubr.msk.f32.gmra.mxu1 %vm364_vm2, %v4340_v39  ;;  %3866 = vmatprep.mubr.msk.f32.mxu0 %vm364_vm2, %v4813_v15 }
  0x61   : > { %3816 = vmatprep.mubr.msk.f32.mxu1 %vm364_vm2, %v4377_v53  ;;  %v4847_v38 = vsel %vm950_vm3, %v1016_v50, %v1017_v46  ;;  %v4858_v58 = vsel %vm950_vm3, %v1017_v46, %v1019_v13  ;;  %v1026_v50 = vrot.slane %v4539_v51, 2  ;;  %v1029_v46 = vrot.slane %v4572_v52, 2  ;;  %v5935_v52 = vld [vmem:[#allocation4_spill] sm:$0xff] }
  0x63   : > { %3867 = vmatmul.mubr.msk.f32.gmra.mxu0 %vm364_vm2, %v4824_v0  ;;  %v5932_v0 = vld [vmem:[#allocation18_spill] sm:$0xff] }
  0x64   : > { %3817 = vmatmul.mubr.msk.f32.gmra.mxu1 %vm364_vm2, %v4380_v54  ;;  %3869 = vmatprep.mubr.msk.f32.mxu0 %vm364_vm2, %v4830_v57  ;;  %v1022_v15 = vrot.slane %v5932_v0, 2 }
  0x65   : > { %3819 = vmatprep.mubr.msk.f32.mxu1 %vm364_vm2, %v4416_v2 }
  0x66   : > { %v4864_v56 = vsel %vm950_vm3, %v1021_v41, %v1022_v15  ;;  %v4875_v63 = vsel %vm950_vm3, %v1022_v15, %v1024_v27  ;;  %v5936_v41 = vld [vmem:[#allocation6_spill] sm:$0xff] }
  0x67   : > { %3870 = vmatmul.mubr.msk.f32.gmra.mxu0 %vm364_vm2, %v4841_v16  ;;  %v5933_v16 = vld [vmem:[#allocation23_spill] sm:$0xff]  ;;  %v4916_v27 = vld [vmem:[%s5804_s1 + $0x20] sm:$0xf] }
  0x68   : > { %3820 = vmatmul.mubr.msk.f32.gmra.mxu1 %vm364_vm2, %v4419_v6  ;;  %3872 = vmatprep.mubr.msk.f32.mxu0 %vm364_vm2, %v4847_v38  ;;  %v1027_v57 = vrot.slane %v5933_v16, 2 }
  0x69   : > { %3822 = vmatprep.mubr.msk.f32.mxu1 %vm364_vm2, %v4451_v31 }
  0x6a   : > { %v4881_v13 = vsel %vm950_vm3, %v1026_v50, %v1027_v57  ;;  %v4890_v15 = vsel %vm950_vm3, %v1027_v57, %v1029_v46  ;;  %v4907_v57 = vld [vmem:[%s5804_s1 + $0x1c] sm:$0xf]  ;;  %v5941_v50 = vld [vmem:[#allocation16_spill] sm:$0xff]  ;;  %v5942_v46 = vld [vmem:[#allocation19_spill] sm:$0xff] }
  0x6b   : > { %3873 = vmatmul.mubr.msk.f32.gmra.mxu0 %vm364_vm2, %v4858_v58  ;;  %5934 = vst [vmem:[#allocation18_spill] sm:$0xff] %v4890_v15 }
  0x6c   : > { %3823 = vmatmul.mubr.msk.f32.gmra.mxu1 %vm364_vm2, %v4454_v32  ;;  %3875 = vmatprep.mubr.msk.f32.mxu0 %vm364_vm2, %v4864_v56 }
  0x6d   : > { %3825 = vmatprep.mubr.msk.f32.mxu1 %vm364_vm2, %v4495_v11 }
  0x6f   : > { %3876 = vmatmul.mubr.msk.f32.gmra.mxu0 %vm364_vm2, %v4875_v63 }
  0x70   : > { %3826 = vmatmul.mubr.msk.f32.gmra.mxu1 %vm364_vm2, %v5932_v0  ;;  %3878 = vmatprep.mubr.msk.f32.mxu0 %vm364_vm2, %v4881_v13 }
  0x71   : > { %3828 = vmatprep.mubr.msk.f32.mxu1 %vm364_vm2, %v4539_v51 }
  0x73   : > { %3879 = vmatmul.mubr.msk.f32.gmra.mxu0 %vm364_vm2, %v4890_v15 }
  0x74   : > { %3829 = vmatmul.mubr.msk.f32.gmra.mxu1 %vm364_vm2, %v5933_v16  ;;  %3933 = vmatprep.mubr.msk.f32.mxu0 %vm364_vm2, %v5935_v52  ;;  %v5943_v52 = vld [vmem:[#allocation21_spill] sm:$0xff] }
  0x75   : > { %3883 = vmatprep.mubr.msk.f32.mxu1 %vm364_vm2, %v4276_v14  ;;  %v5937_v14 = vld [vmem:[#allocation8_spill] sm:$0xff] }
  0x77   : > { %3934 = vmatmul.mubr.msk.f32.vlgmr.msra.gmra.mxu0 %vm364_vm2, %v5936_v41  ;;  %v5944_v41 = vld [vmem:[#allocation24_spill] sm:$0xff] }
  0x78   : > { %3884 = vmatmul.mubr.msk.f32.vlgmr.msra.gmra.mxu1 %vm364_vm2, %v4281_v17  ;;  %4032 = vmatpush3.msk.msra.mxu0 %vm429_vm0, %v4647_v23  ;;  %v5938_v17 = vld [vmem:[#allocation10_spill] sm:$0xff]  ;;  %v5939_v23 = vld [vmem:[#allocation12_spill] sm:$0xff] }
  0x79   : > { %3982 = vmatpush3.msk.msra.mxu1 %vm429_vm0, %v4634_v9  ;;  %3886 = vmatprep.mubr.msk.f32.mxu1 %vm364_vm2, %v4323_v33  ;;  %v5940_v9 = vld [vmem:[#allocation14_spill] sm:$0xff] }
  0x7a   : > { %3936 = vmatprep.mubr.msk.f32.mxu0 %vm364_vm2, %v5937_v14  ;;  %4081 = vmatprep.subr.msk.mxu1 %vm429_vm0, %v4907_v57 }
  0x7b   : > { %3937 = vmatmul.mubr.msk.f32.gmra.mxu0 %vm364_vm2, %v5938_v17  ;;  %4131 = vmatprep.subr.msk.mxu0 %vm429_vm0, %v4916_v27 }
  0x7c   : > { %3887 = vmatmul.mubr.msk.f32.gmra.mxu1 %vm364_vm2, %v4326_v34  ;;  %3939 = vmatprep.mubr.msk.f32.mxu0 %vm364_vm2, %v5939_v23 }
  0x7d   : > { %3889 = vmatprep.mubr.msk.f32.mxu1 %vm364_vm2, %v4363_v47 }
  0x7f   : > { %3940 = vmatmul.mubr.msk.f32.gmra.mxu0 %vm364_vm2, %v5940_v9 }
  0x80   : > { %3890 = vmatmul.mubr.msk.f32.gmra.mxu1 %vm364_vm2, %v4366_v48  ;;  %3942 = vmatprep.mubr.msk.f32.mxu0 %vm364_vm2, %v5941_v50  ;;  %v5945_v50 = vld [vmem:[#allocation26_spill] sm:$0xff] }
  0x81   : > { %3892 = vmatprep.mubr.msk.f32.mxu1 %vm364_vm2, %v4383_v55 }
  0x83   : > { %3943 = vmatmul.mubr.msk.f32.gmra.mxu0 %vm364_vm2, %v5942_v46 }
  0x84   : > { %3893 = vmatmul.mubr.msk.f32.gmra.mxu1 %vm364_vm2, %v4399_v61  ;;  %3945 = vmatprep.mubr.msk.f32.mxu0 %vm364_vm2, %v5943_v52  ;;  %v5033_v52 = vld [vmem:[%s4250_s24 + $0x190] sm:$0x3] }
  0x85   : > { %3895 = vmatprep.mubr.msk.f32.mxu1 %vm364_vm2, %v4443_v25 }
  0x87   : > { %3946 = vmatmul.mubr.msk.f32.gmra.mxu0 %vm364_vm2, %v5944_v41  ;;  %v5020_v41 = vld [vmem:[%s4250_s24 + $0x188] sm:$0xff] }
  0x88   : > { %3896 = vmatmul.mubr.msk.f32.gmra.mxu1 %vm364_vm2, %v4446_v30  ;;  %3948 = vmatprep.mubr.msk.f32.mxu0 %vm364_vm2, %v5945_v50  ;;  %v5946_v50 = vld [vmem:[#allocation2_spill] sm:$0xff] }
  0x89   : > { %3898 = vmatprep.mubr.msk.f32.mxu1 %vm364_vm2, %v4487_v59 }
  0x8b   : > { %3949 = vmatmul.mubr.msk.f32.gmra.mxu0 %vm364_vm2, %v4581_v22  ;;  %v5947_v22 = vld [vmem:[#allocation3_spill] sm:$0xff] }
  0x8c   : > { %3899 = vmatmul.mubr.msk.f32.gmra.mxu1 %vm364_vm2, %v4490_v1  ;;  %3951 = vmatprep.mubr.msk.f32.mxu0 %vm364_vm2, %v4591_v7  ;;  %v5948_v7 = vld [vmem:[#allocation5_spill] sm:$0xff] }
  0x8d   : > { %3901 = vmatprep.mubr.msk.f32.mxu1 %vm364_vm2, %v4531_v24 }
  0x8f   : > { %3952 = vmatmul.mubr.msk.f32.gmra.mxu0 %vm364_vm2, %v4606_v29  ;;  %v5949_v29 = vld [vmem:[#allocation7_spill] sm:$0xff] }
  0x90   : > { %3902 = vmatmul.mubr.msk.f32.gmra.mxu1 %vm364_vm2, %v4534_v40  ;;  %3954 = vmatprep.mubr.msk.f32.mxu0 %vm364_vm2, %v5946_v50  ;;  %v5950_v50 = vld [vmem:[#allocation9_spill] sm:$0xff] }
  0x91   : > { %3904 = vmatprep.mubr.msk.f32.mxu1 %vm364_vm2, %v4259_v5 }
  0x93   : > { %3955 = vmatmul.mubr.msk.f32.gmra.mxu0 %vm364_vm2, %v5947_v22  ;;  %v5951_v22 = vld [vmem:[#allocation11_spill] sm:$0xff] }
  0x94   : > { %3905 = vmatmul.mubr.msk.f32.gmra.mxu1 %vm364_vm2, %v4264_v8  ;;  %3957 = vmatprep.mubr.msk.f32.mxu0 %vm364_vm2, %v5948_v7  ;;  %v5952_v7 = vld [vmem:[#allocation13_spill] sm:$0xff] }
  0x95   : > { %3907 = vmatprep.mubr.msk.f32.mxu1 %vm364_vm2, %v4285_v19 }
  0x97   : > { %3958 = vmatmul.mubr.msk.f32.gmra.mxu0 %vm364_vm2, %v5949_v29  ;;  %v5953_v29 = vld [vmem:[#allocation15_spill] sm:$0xff] }
  0x98   : > { %3908 = vmatmul.mubr.msk.f32.gmra.mxu1 %vm364_vm2, %v4288_v20  ;;  %3960 = vmatprep.mubr.msk.f32.mxu0 %vm364_vm2, %v5950_v50  ;;  %v5954_v50 = vld [vmem:[#allocation17_spill] sm:$0xff] }
  0x99   : > { %3910 = vmatprep.mubr.msk.f32.mxu1 %vm364_vm2, %v4329_v35 }
  0x9b   : > { %3961 = vmatmul.mubr.msk.f32.gmra.mxu0 %vm364_vm2, %v5951_v22  ;;  %v5955_v22 = vld [vmem:[#allocation20_spill] sm:$0xff] }
  0x9c   : > { %3911 = vmatmul.mubr.msk.f32.gmra.mxu1 %vm364_vm2, %v4340_v39  ;;  %3963 = vmatprep.mubr.msk.f32.mxu0 %vm364_vm2, %v5952_v7  ;;  %v5956_v7 = vld [vmem:[#allocation22_spill] sm:$0xff] }
  0x9d   : > { %3913 = vmatprep.mubr.msk.f32.mxu1 %vm364_vm2, %v4377_v53 }
  0x9f   : > { %3964 = vmatmul.mubr.msk.f32.gmra.mxu0 %vm364_vm2, %v5953_v29  ;;  %v5017_v29 = vld [vmem:[%s4250_s24 + $0x180] sm:$0xff] }
  0xa0   : > { %3914 = vmatmul.mubr.msk.f32.gmra.mxu1 %vm364_vm2, %v4380_v54  ;;  %3966 = vmatprep.mubr.msk.f32.mxu0 %vm364_vm2, %v5954_v50  ;;  %v5957_v50 = vld [vmem:[#allocation25_spill] sm:$0xff] }
  0xa1   : > { %3916 = vmatprep.mubr.msk.f32.mxu1 %vm364_vm2, %v4416_v2 }
  0xa3   : > { %3967 = vmatmul.mubr.msk.f32.gmra.mxu0 %vm364_vm2, %v5955_v22  ;;  %v1623_v22 = vrot.slane %v5020_v41, 1 }
  0xa4   : > { %3917 = vmatmul.mubr.msk.f32.gmra.mxu1 %vm364_vm2, %v4419_v6  ;;  %3969 = vmatprep.mubr.msk.f32.mxu0 %vm364_vm2, %v5956_v7  ;;  %v1622_v7 = vrot.slane %v5017_v29, 1 }
  0xa5   : > { %3919 = vmatprep.mubr.msk.f32.mxu1 %vm364_vm2, %v4451_v31 }
  0xa7   : > { %3970 = vmatmul.mubr.msk.f32.gmra.mxu0 %vm364_vm2, %v5957_v50  ;;  %v5045_v50 = vsel %vm283_vm1, %v1622_v7, %v1623_v22 }
  0xa8   : > { %3920 = vmatmul.mubr.msk.f32.gmra.mxu1 %vm364_vm2, %v4454_v32  ;;  %3972 = vmatprep.mubr.msk.f32.mxu0 %vm364_vm2, %v4567_v44  ;;  %v1625_v44 = vrot.slane %v5033_v52, 1  ;;  %5958 = vst [vmem:[#allocation23_spill] sm:$0xff] %v5045_v50 }
  0xa9   : > { %3922 = vmatprep.mubr.msk.f32.mxu1 %vm364_vm2, %v4495_v11 }
  0xab   : > { %3973 = vmatmul.mubr.msk.f32.gmra.mxu0 %vm364_vm2, %v4588_v62  ;;  %v5054_v62 = vsel %vm283_vm1, %v1623_v22, %v1625_v44  ;;  %v5970_v22 = vld [vmem:[#allocation44_spill] sm:$0xff] }
  0xac   : > { %3923 = vmatmul.mubr.msk.f32.gmra.mxu1 %vm364_vm2, %v5932_v0  ;;  %3975 = vmatprep.mubr.msk.f32.mxu0 %vm364_vm2, %v4596_v43  ;;  %5959 = vst [vmem:[#allocation4_spill] sm:$0xff] %v5054_v62 }
  0xad   : > { %3925 = vmatprep.mubr.msk.f32.mxu1 %vm364_vm2, %v4539_v51 }
  0xaf   : > { %3976 = vmatmul.mubr.msk.f32.gmra.mxu0 %vm364_vm2, %v4611_v36  ;;  %v5231_v36 = vld [vmem:[%s4250_s24 + $0x198] sm:$0xff] }
  0xb0   : > { %3926 = vmatmul.mubr.msk.f32.gmra.mxu1 %vm364_vm2, %v5933_v16  ;;  %3978 = vmatprep.mubr.msk.f32.mxu0 %vm364_vm2, %v5045_v50 }
  0xb1   : > { %3928 = vmatprep.mubr.msk.f32.mxu1 %vm364_vm2, %v5017_v29 }
  0xb3   : > { %3979 = vmatmul.mubr.msk.f32.gmra.mxu0 %vm364_vm2, %v5054_v62 }
  0xb4   : > { %3929 = vmatmul.mubr.msk.f32.gmra.mxu1 %vm364_vm2, %v5020_v41  ;;  %4033 = vmatprep.mubr.msk.f32.mxu0 %vm364_vm2, %v4323_v33  ;;  %v5960_v33 = vld [vmem:[#allocation34_spill] sm:$0xff] }
  0xb5   : > { %3983 = vmatprep.mubr.msk.f32.mxu1 %vm364_vm2, %v4629_v18 }
  0xb7   : > { %4034 = vmatmul.mubr.msk.f32.vlgmr.msra.gmra.mxu0 %vm364_vm2, %v4326_v34  ;;  %v5961_v34 = vld [vmem:[#allocation35_spill] sm:$0xff] }
  0xb8   : > { %3984 = vmatmul.mubr.msk.f32.vlgmr.msra.gmra.mxu1 %vm364_vm2, %v4641_v3  ;;  %4132 = vmatpush3.msk.msra.mxu0 %vm429_vm0, %v4916_v27 }
  0xb9   : > { %4082 = vmatpush3.msk.msra.mxu1 %vm429_vm0, %v4907_v57  ;;  %3986 = vmatprep.mubr.msk.f32.mxu1 %vm364_vm2, %v4654_v4  ;;  %v1891_v57 = vrot.slane %v5017_v29, 2 }
  0xba   : > { %4036 = vmatprep.mubr.msk.f32.mxu0 %vm364_vm2, %v4363_v47  ;;  %v5962_v47 = vld [vmem:[#allocation36_spill] sm:$0xff] }
  0xbb   : > { %4037 = vmatmul.mubr.msk.f32.gmra.mxu0 %vm364_vm2, %v4366_v48  ;;  %v5963_v48 = vld [vmem:[#allocation37_spill] sm:$0xff] }
  0xbc   : > { %3987 = vmatmul.mubr.msk.f32.gmra.mxu1 %vm364_vm2, %v4671_v21  ;;  %4039 = vmatprep.mubr.msk.f32.mxu0 %vm364_vm2, %v4383_v55  ;;  %v5964_v55 = vld [vmem:[#allocation38_spill] sm:$0xff] }
  0xbd   : > { %3989 = vmatprep.mubr.msk.f32.mxu1 %vm364_vm2, %v4677_v10 }
  0xbf   : > { %4040 = vmatmul.mubr.msk.f32.gmra.mxu0 %vm364_vm2, %v4399_v61 }
  0xc0   : > { %3990 = vmatmul.mubr.msk.f32.gmra.mxu1 %vm364_vm2, %v4688_v60  ;;  %4042 = vmatprep.mubr.msk.f32.mxu0 %vm364_vm2, %v4443_v25  ;;  %v5966_v25 = vld [vmem:[#allocation40_spill] sm:$0xff] }
  0xc1   : > { %3992 = vmatprep.mubr.msk.f32.mxu1 %vm364_vm2, %v4694_v49 }
  0xc3   : > { %4043 = vmatmul.mubr.msk.f32.gmra.mxu0 %vm364_vm2, %v4446_v30  ;;  %v5967_v30 = vld [vmem:[#allocation41_spill] sm:$0xff] }
  0xc4   : > { %3993 = vmatmul.mubr.msk.f32.gmra.mxu1 %vm364_vm2, %v5960_v33  ;;  %4045 = vmatprep.mubr.msk.f32.mxu0 %vm364_vm2, %v4487_v59 }
  0xc5   : > { %3995 = vmatprep.mubr.msk.f32.mxu1 %vm364_vm2, %v4711_v12 }
  0xc7   : > { %4046 = vmatmul.mubr.msk.f32.gmra.mxu0 %vm364_vm2, %v4490_v1 }
  0xc8   : > { %3996 = vmatmul.mubr.msk.f32.gmra.mxu1 %vm364_vm2, %v5961_v34  ;;  %4048 = vmatprep.mubr.msk.f32.mxu0 %vm364_vm2, %v4531_v24  ;;  %v5968_v24 = vld [vmem:[#allocation42_spill] sm:$0xff] }
  0xc9   : > { %3998 = vmatprep.mubr.msk.f32.mxu1 %vm364_vm2, %v4728_v37 }
  0xcb   : > { %4049 = vmatmul.mubr.msk.f32.gmra.mxu0 %vm364_vm2, %v4534_v40  ;;  %v5969_v40 = vld [vmem:[#allocation43_spill] sm:$0xff] }
  0xcc   : > { %3999 = vmatmul.mubr.msk.f32.gmra.mxu1 %vm364_vm2, %v5962_v47  ;;  %4051 = vmatprep.mubr.msk.f32.mxu0 %vm364_vm2, %v4259_v5 }
  0xcd   : > { %4001 = vmatprep.mubr.msk.f32.mxu1 %vm364_vm2, %v4745_v28 }
  0xcf   : > { %4052 = vmatmul.mubr.msk.f32.gmra.mxu0 %vm364_vm2, %v4264_v8 }
  0xd0   : > { %4002 = vmatmul.mubr.msk.f32.gmra.mxu1 %vm364_vm2, %v5963_v48  ;;  %4054 = vmatprep.mubr.msk.f32.mxu0 %vm364_vm2, %v4285_v19  ;;  %v5965_v19 = vld [vmem:[#allocation39_spill] sm:$0xff] }
  0xd1   : > { %4004 = vmatprep.mubr.msk.f32.mxu1 %vm364_vm2, %v4762_v45 }
  0xd3   : > { %4055 = vmatmul.mubr.msk.f32.gmra.mxu0 %vm364_vm2, %v4288_v20 }
  0xd4   : > { %4005 = vmatmul.mubr.msk.f32.gmra.mxu1 %vm364_vm2, %v5964_v55  ;;  %4057 = vmatprep.mubr.msk.f32.mxu0 %vm364_vm2, %v4329_v35 }
  0xd5   : > { %4007 = vmatprep.mubr.msk.f32.mxu1 %vm364_vm2, %v4779_v26 }
  0xd7   : > { %v5134_v5 = vpop.f32.mrf.mxu0  ;;  %4058 = vmatmul.mubr.msk.f32.gmra.mxu0 %vm364_vm2, %v4340_v39 }
  0xd8   : > { %v5138_v8 = vpop.f32.mrf.mxu1  ;;  %4008 = vmatmul.mubr.msk.f32.gmra.mxu1 %vm364_vm2, %v5965_v19  ;;  %4060 = vmatprep.mubr.msk.f32.mxu0 %vm364_vm2, %v4377_v53 }
  0xd9   : > { %v5144_v20 = vpop.f32.mrf.mxu0  ;;  %4010 = vmatprep.mubr.msk.f32.mxu1 %vm364_vm2, %v4796_v42 }
  0xda   : > { %v5148_v35 = vpop.f32.mrf.mxu1 }
  0xdb   : > { %v5150_v61 = vpop.f32.mrf.mxu0  ;;  %4061 = vmatmul.mubr.msk.f32.gmra.mxu0 %vm364_vm2, %v4380_v54 }
  0xdc   : > { %v5154_v39 = vpop.f32.mrf.mxu1  ;;  %4011 = vmatmul.mubr.msk.f32.gmra.mxu1 %vm364_vm2, %v5966_v25  ;;  %4063 = vmatprep.mubr.msk.f32.mxu0 %vm364_vm2, %v4416_v2 }
  0xdd   : > { %v5160_v53 = vpop.f32.mrf.mxu0  ;;  %4013 = vmatprep.mubr.msk.f32.mxu1 %vm364_vm2, %v5967_v30 }
  0xde   : > { %v5164_v59 = vpop.f32.mrf.mxu1 }
  0xdf   : > { %v5166_v1 = vpop.f32.mrf.mxu0  ;;  %4064 = vmatmul.mubr.msk.f32.gmra.mxu0 %vm364_vm2, %v4419_v6 }
  0xe0   : > { %v5170_v54 = vpop.f32.mrf.mxu1  ;;  %4014 = vmatmul.mubr.msk.f32.gmra.mxu1 %vm364_vm2, %v5968_v24  ;;  %4066 = vmatprep.mubr.msk.f32.mxu0 %vm364_vm2, %v4451_v31 }
  0xe1   : > { %v5176_v2 = vpop.f32.mrf.mxu0  ;;  %4016 = vmatprep.mubr.msk.f32.mxu1 %vm364_vm2, %v5969_v40 }
  0xe2   : > { %v5180_v7 = vpop.f32.mrf.mxu1 }
  0xe3   : > { %v5182_v44 = vpop.f32.mrf.mxu0  ;;  %4067 = vmatmul.mubr.msk.f32.gmra.mxu0 %vm364_vm2, %v4454_v32 }
  0xe4   : > { %v5186_v6 = vpop.f32.mrf.mxu1  ;;  %4017 = vmatmul.mubr.msk.f32.gmra.mxu1 %vm364_vm2, %v5970_v22  ;;  %4069 = vmatprep.mubr.msk.f32.mxu0 %vm364_vm2, %v4495_v11 }
  0xe5   : > { %v5192_v31 = vpop.f32.mrf.mxu0  ;;  %4019 = vmatprep.mubr.msk.f32.mxu1 %vm364_vm2, %v4847_v38 }
  0xe6   : > { %v5196_v18 = vpop.f32.mrf.mxu1 }
  0xe7   : > { %v5198_v3 = vpop.f32.mrf.mxu0  ;;  %4070 = vmatmul.mubr.msk.f32.gmra.mxu0 %vm364_vm2, %v5932_v0  ;;  %v1892_v0 = vrot.slane %v5020_v41, 2 }
  0xe8   : > { %v5202_v32 = vpop.f32.mrf.mxu1  ;;  %4020 = vmatmul.mubr.msk.f32.gmra.mxu1 %vm364_vm2, %v4858_v58  ;;  %4072 = vmatprep.mubr.msk.f32.mxu0 %vm364_vm2, %v4539_v51 }
  0xe9   : > { %5971 = vst [vmem:[#allocation6_spill] sm:$0xff] %v5202_v32  ;;  %v5208_v11 = vpop.f32.mrf.mxu0  ;;  %4022 = vmatprep.mubr.msk.f32.mxu1 %vm364_vm2, %v4864_v56  ;;  %v5250_v32 = vld [vmem:[%s4250_s24 + $0x1a0] sm:$0xff] }
  0xea   : > { %v5213_v27 = vpop.f32.mrf.mxu1 }
  0xeb   : > { %5972 = vst [vmem:[#allocation8_spill] sm:$0xff] %v5213_v27  ;;  %v5216_v62 = vpop.f32.mrf.mxu0  ;;  %4073 = vmatmul.mubr.msk.f32.gmra.mxu0 %vm364_vm2, %v5933_v16  ;;  %v1894_v27 = vrot.slane %v5033_v52, 2  ;;  %v5237_v16 = vsel %vm950_vm3, %v1891_v57, %v1892_v0 }
  0xec   : > { %v5220_v50 = vpop.f32.mrf.mxu1  ;;  %4023 = vmatmul.mubr.msk.f32.gmra.mxu1 %vm364_vm2, %v4875_v63  ;;  %4075 = vmatprep.mubr.msk.f32.mxu0 %vm364_vm2, %v5017_v29  ;;  %5975 = vst [vmem:[#allocation14_spill] sm:$0xff] %v5237_v16 }
  0xed   : > { %5973 = vst [vmem:[#allocation10_spill] sm:$0xff] %v5220_v50  ;;  %v5226_v51 = vpop.f32.mrf.mxu0  ;;  %4025 = vmatprep.mubr.msk.f32.mxu1 %vm364_vm2, %v4881_v13  ;;  %v5257_v57 = vsel %vm950_vm3, %v1892_v0, %v1894_v27 }
  0xee   : > { %v5234_v43 = vpop.f32.mrf.mxu1  ;;  %5977 = vst [vmem:[#allocation34_spill] sm:$0xff] %v5257_v57 }
  0xef   : > { %5974 = vst [vmem:[#allocation12_spill] sm:$0xff] %v5234_v43  ;;  %v5239_v50 = vpop.f32.mrf.mxu0  ;;  %4076 = vmatmul.mubr.msk.f32.gmra.mxu0 %vm364_vm2, %v5020_v41 }
  0xf0   : > { %v5243_v29 = vpop.f32.mrf.mxu1  ;;  %4026 = vmatmul.mubr.msk.f32.gmra.mxu1 %vm364_vm2, %v4890_v15  ;;  %4078 = vmatprep.mubr.msk.f32.mxu0 %vm364_vm2, %v5231_v36 }
  0xf1   : > { %5976 = vst [vmem:[#allocation19_spill] sm:$0xff] %v5243_v29  ;;  %v5252_v52 = vpop.f32.mrf.mxu0  ;;  %4028 = vmatprep.mubr.msk.f32.mxu1 %vm364_vm2, %v5237_v16 }
  0xf2   : > { %v5259_v43 = vpop.f32.mrf.mxu1 }
  0xf3   : > { %5978 = vst [vmem:[#allocation35_spill] sm:$0xff] %v5259_v43  ;;  %v5261_v41 = vpop.f32.mrf.mxu0  ;;  %4079 = vmatmul.mubr.msk.f32.gmra.mxu0 %vm364_vm2, %v5250_v32 }
  0xf4   : > { %v5265_v29 = vpop.f32.mrf.mxu1  ;;  %4029 = vmatmul.mubr.msk.f32.gmra.mxu1 %vm364_vm2, %v5257_v57  ;;  %4133 = vmatprep.mubr.msk.f32.mxu0 %vm364_vm2, %v4654_v4 }
  0xf5   : > { %5979 = vst [vmem:[#allocation36_spill] sm:$0xff] %v5265_v29  ;;  %v5271_v15 = vpop.f32.mrf.mxu0  ;;  %4083 = vmatprep.mubr.msk.f32.mxu1 %vm364_vm2, %v5937_v14 }
  0xf6   : > { %v5275_v27 = vpop.f32.mrf.mxu1 }
  0xf7   : > { %5980 = vst [vmem:[#allocation37_spill] sm:$0xff] %v5275_v27  ;;  %v3835_v0 = vpop.f32.mrf.mxu0  ;;  %4134 = vmatmul.mubr.msk.f32.vlgmr.msra.gmra.mxu0 %vm364_vm2, %v4671_v21 }
  0xf8   : > { %v3785_v43 = vpop.f32.mrf.mxu1  ;;  %4084 = vmatmul.mubr.msk.f32.vlgmr.msra.gmra.mxu1 %vm364_vm2, %v5938_v17  ;;  %4136 = vmatprep.mubr.msk.f32.mxu0 %vm364_vm2, %v4677_v10 }
  0xf9   : > { %v797_v4 = vadd.f32 %v3785_v43, %v5134_v5  ;;  %v1164_v29 = vpop.f32.mrf.mxu0  ;;  %4086 = vmatprep.mubr.msk.f32.mxu1 %vm364_vm2, %v5939_v23  ;;  %v5981_v23 = vld [vmem:[#allocation16_spill] sm:$0xff] }
  0xfa   : > { %v791_v14 = vpop.f32.mrf.mxu1 }
  0xfb   : > { %v5286_v57 = vadd.f32 %v3835_v0, %v797_v4  ;;  %v792_v27 = vadd.f32 %v791_v14, %v5144_v20  ;;  %v3838_v16 = vpop.f32.mrf.mxu0  ;;  %4137 = vmatmul.mubr.msk.f32.gmra.mxu0 %vm364_vm2, %v4688_v60  ;;  %v5983_v14 = vld [vmem:[#allocation24_spill] sm:$0xff] }
  0xfc   : > { %v3788_v21 = vpop.f32.mrf.mxu1  ;;  %4087 = vmatmul.mubr.msk.f32.gmra.mxu1 %vm364_vm2, %v5940_v9  ;;  %4139 = vmatprep.mubr.msk.f32.mxu0 %vm364_vm2, %v4694_v49 }
  0xfd   : > { %v5295_v43 = vadd.f32 %v1164_v29, %v792_v27  ;;  %v807_v10 = vadd.f32 %v3788_v21, %v5150_v61  ;;  %v1174_v17 = vpop.f32.mrf.mxu0  ;;  %4089 = vmatprep.mubr.msk.f32.mxu1 %vm364_vm2, %v5981_v23 }
  0xfe   : > { %v801_v5 = vpop.f32.mrf.mxu1 }
  0xff   : > { %v5300_v20 = vadd.f32 %v3838_v16, %v807_v10  ;;  %v802_v60 = vadd.f32 %v801_v5, %v5160_v53  ;;  %v3841_v0 = vpop.f32.mrf.mxu0  ;;  %4140 = vmatmul.mubr.msk.f32.gmra.mxu0 %vm364_vm2, %v5960_v33  ;;  %v5982_v16 = vld [vmem:[#allocation21_spill] sm:$0xff]  ;;  %v5984_v10 = vld [vmem:[#allocation26_spill] sm:$0xff] }
 0x100   : > { %v3791_v9 = vpop.f32.mrf.mxu1  ;;  %4090 = vmatmul.mubr.msk.f32.gmra.mxu1 %vm364_vm2, %v5942_v46  ;;  %4142 = vmatprep.mubr.msk.f32.mxu0 %vm364_vm2, %v4711_v12 }
 0x101   : > { %v5309_v49 = vadd.f32 %v1174_v17, %v802_v60  ;;  %v817_v61 = vadd.f32 %v3791_v9, %v5166_v1  ;;  %v1184_v29 = vpop.f32.mrf.mxu0  ;;  %4092 = vmatprep.mubr.msk.f32.mxu1 %vm364_vm2, %v5982_v16  ;;  %v5985_v60 = vld [vmem:[#allocation28_spill] sm:$0xff]  ;;  %v5986_v9 = vld [vmem:[#allocation30_spill] sm:$0xff] }
 0x102   : > { %v811_v53 = vpop.f32.mrf.mxu1 }
 0x103   : > { %v5314_v27 = vadd.f32 %v3841_v0, %v817_v61  ;;  %v812_v33 = vadd.f32 %v811_v53, %v5176_v2  ;;  %v3844_v4 = vpop.f32.mrf.mxu0  ;;  %4143 = vmatmul.mubr.msk.f32.gmra.mxu0 %vm364_vm2, %v5961_v34  ;;  %v5987_v53 = vld [vmem:[#allocation32_spill] sm:$0xff] }
 0x104   : > { %v3794_v46 = vpop.f32.mrf.mxu1  ;;  %4093 = vmatmul.mubr.msk.f32.gmra.mxu1 %vm364_vm2, %v5983_v14  ;;  %4145 = vmatprep.mubr.msk.f32.mxu0 %vm364_vm2, %v4728_v37 }
 0x105   : > { %v5323_v12 = vadd.f32 %v1184_v29, %v812_v33  ;;  %v827_v1 = vadd.f32 %v3794_v46, %v5182_v44  ;;  %v1194_v21 = vpop.f32.mrf.mxu0  ;;  %4095 = vmatprep.mubr.msk.f32.mxu1 %vm364_vm2, %v5984_v10 }
 0x106   : > { %v821_v2 = vpop.f32.mrf.mxu1 }
 0x107   : > { %v5328_v17 = vadd.f32 %v3844_v4, %v827_v1  ;;  %v822_v34 = vadd.f32 %v821_v2, %v5192_v31  ;;  %v3847_v23 = vpop.f32.mrf.mxu0  ;;  %4146 = vmatmul.mubr.msk.f32.gmra.mxu0 %vm364_vm2, %v5962_v47  ;;  %v5988_v4 = vld [vmem:[#allocation2_spill] sm:$0xff]  ;;  %v5990_v2 = vld [vmem:[#allocation5_spill] sm:$0xff] }
 0x108   : > { %v3797_v5 = vpop.f32.mrf.mxu1  ;;  %4096 = vmatmul.mubr.msk.f32.gmra.mxu1 %vm364_vm2, %v5985_v60  ;;  %4148 = vmatprep.mubr.msk.f32.mxu0 %vm364_vm2, %v4745_v28  ;;  %v5991_v60 = vld [vmem:[#allocation7_spill] sm:$0xff] }
 0x109   : > { %v5337_v37 = vadd.f32 %v1194_v21, %v822_v34  ;;  %v837_v44 = vadd.f32 %v3797_v5, %v5198_v3  ;;  %v1204_v0 = vpop.f32.mrf.mxu0  ;;  %4098 = vmatprep.mubr.msk.f32.mxu1 %vm364_vm2, %v5986_v9  ;;  %v5989_v21 = vld [vmem:[#allocation3_spill] sm:$0xff] }
 0x10a   : > { %v831_v31 = vpop.f32.mrf.mxu1 }
 0x10b   : > { %v5342_v61 = vadd.f32 %v3847_v23, %v837_v44  ;;  %v832_v47 = vadd.f32 %v831_v31, %v5208_v11  ;;  %v3850_v29 = vpop.f32.mrf.mxu0  ;;  %4149 = vmatmul.mubr.msk.f32.gmra.mxu0 %vm364_vm2, %v5963_v48 }
 0x10c   : > { %v3800_v16 = vpop.f32.mrf.mxu1  ;;  %4099 = vmatmul.mubr.msk.f32.gmra.mxu1 %vm364_vm2, %v5987_v53  ;;  %4151 = vmatprep.mubr.msk.f32.mxu0 %vm364_vm2, %v4762_v45  ;;  %v5994_v53 = vld [vmem:[#allocation13_spill] sm:$0xff] }
 0x10d   : > { %v5351_v28 = vadd.f32 %v1204_v0, %v832_v47  ;;  %v847_v3 = vadd.f32 %v3800_v16, %v5216_v62  ;;  %v1214_v33 = vpop.f32.mrf.mxu0  ;;  %4101 = vmatprep.mubr.msk.f32.mxu1 %vm364_vm2, %v5988_v4  ;;  %v5992_v0 = vld [vmem:[#allocation9_spill] sm:$0xff] }
 0x10e   : > { %v841_v11 = vpop.f32.mrf.mxu1 }
 0x10f   : > { %v5356_v46 = vadd.f32 %v3850_v29, %v847_v3  ;;  %v842_v48 = vadd.f32 %v841_v11, %v5226_v51  ;;  %v3853_v14 = vpop.f32.mrf.mxu0  ;;  %4152 = vmatmul.mubr.msk.f32.gmra.mxu0 %vm364_vm2, %v5964_v55  ;;  %v5993_v29 = vld [vmem:[#allocation11_spill] sm:$0xff] }
 0x110   : > { %v3803_v1 = vpop.f32.mrf.mxu1  ;;  %4102 = vmatmul.mubr.msk.f32.gmra.mxu1 %vm364_vm2, %v5989_v21  ;;  %4154 = vmatprep.mubr.msk.f32.mxu0 %vm364_vm2, %v4779_v26  ;;  %v5995_v11 = vld [vmem:[#allocation15_spill] sm:$0xff] }
 0x111   : > { %v5365_v62 = vadd.f32 %v1214_v33, %v842_v48  ;;  %v857_v45 = vadd.f32 %v3803_v1, %v5239_v50  ;;  %v1224_v10 = vpop.f32.mrf.mxu0  ;;  %4104 = vmatprep.mubr.msk.f32.mxu1 %vm364_vm2, %v5990_v2 }
 0x112   : > { %v851_v51 = vpop.f32.mrf.mxu1 }
 0x113   : > { %v5370_v34 = vadd.f32 %v3853_v14, %v857_v45  ;;  %v852_v55 = vadd.f32 %v851_v51, %v5252_v52  ;;  %v3856_v23 = vpop.f32.mrf.mxu0  ;;  %4155 = vmatmul.mubr.msk.f32.gmra.mxu0 %vm364_vm2, %v5965_v19  ;;  %v5996_v14 = vld [vmem:[#allocation17_spill] sm:$0xff]  ;;  %v5998_v51 = vld [vmem:[#allocation22_spill] sm:$0xff] }
 0x114   : > { %v3806_v5 = vpop.f32.mrf.mxu1  ;;  %4105 = vmatmul.mubr.msk.f32.gmra.mxu1 %vm364_vm2, %v5991_v60  ;;  %4157 = vmatprep.mubr.msk.f32.mxu0 %vm364_vm2, %v4796_v42  ;;  %v5999_v60 = vld [vmem:[#allocation25_spill] sm:$0xff] }
 0x115   : > { %v5379_v26 = vadd.f32 %v1224_v10, %v852_v55  ;;  %v867_v50 = vadd.f32 %v3806_v5, %v5261_v41  ;;  %v1234_v44 = vpop.f32.mrf.mxu0  ;;  %4107 = vmatprep.mubr.msk.f32.mxu1 %vm364_vm2, %v5992_v0  ;;  %v5997_v10 = vld [vmem:[#allocation20_spill] sm:$0xff] }
 0x116   : > { %v861_v52 = vpop.f32.mrf.mxu1 }
 0x117   : > { %v5384_v9 = vadd.f32 %v3856_v23, %v867_v50  ;;  %v862_v19 = vadd.f32 %v861_v52, %v5271_v15  ;;  %v3859_v31 = vpop.f32.mrf.mxu0  ;;  %4158 = vmatmul.mubr.msk.f32.gmra.mxu0 %vm364_vm2, %v5966_v25 }
 0x118   : > { %v3809_v47 = vpop.f32.mrf.mxu1  ;;  %4108 = vmatmul.mubr.msk.f32.gmra.mxu1 %vm364_vm2, %v5993_v29  ;;  %4160 = vmatprep.mubr.msk.f32.mxu0 %vm364_vm2, %v5967_v30  ;;  %v6002_v29 = vld [vmem:[#allocation6_spill] sm:$0xff] }
 0x119   : > { %v5393_v42 = vadd.f32 %v1234_v44, %v862_v19  ;;  %v877_v41 = vadd.f32 %v3809_v47, %v5138_v8  ;;  %v1244_v16 = vpop.f32.mrf.mxu0  ;;  %4110 = vmatprep.mubr.msk.f32.mxu1 %vm364_vm2, %v5994_v53  ;;  %v6000_v44 = vld [vmem:[#allocation27_spill] sm:$0xff]  ;;  %v2428_v53 = vrot.slane %v5250_v32, 1 }
 0x11a   : > { %v871_v15 = vpop.f32.mrf.mxu1 }
 0x11b   : > { %v5398_v3 = vadd.f32 %v3859_v31, %v877_v41  ;;  %v872_v25 = vadd.f32 %v871_v15, %v5148_v35  ;;  %v3862_v33 = vpop.f32.mrf.mxu0  ;;  %4161 = vmatmul.mubr.msk.f32.gmra.mxu0 %vm364_vm2, %v5968_v24  ;;  %v2697_v31 = vrot.slane %v5250_v32, 2  ;;  %v6008_v32 = vld [vmem:[#allocation10_spill] sm:$0xff] }
 0x11c   : > { %v3812_v4 = vpop.f32.mrf.mxu1  ;;  %4111 = vmatmul.mubr.msk.f32.gmra.mxu1 %vm364_vm2, %v5995_v11  ;;  %4163 = vmatprep.mubr.msk.f32.mxu0 %vm364_vm2, %v5969_v40 }
 0x11d   : > { %v5407_v8 = vadd.f32 %v1244_v16, %v872_v25  ;;  %v887_v30 = vadd.f32 %v3812_v4, %v5154_v39  ;;  %v1254_v48 = vpop.f32.mrf.mxu0  ;;  %4113 = vmatprep.mubr.msk.f32.mxu1 %vm364_vm2, %v5996_v14  ;;  %v6003_v16 = vld [vmem:[#allocation31_spill] sm:$0xff]  ;;  %v6006_v14 = vld [vmem:[#allocation33_spill] sm:$0xff] }
 0x11e   : > { %v881_v35 = vpop.f32.mrf.mxu1  ;;  %v225_v25 = vld [vmem:[%s4250_s24 + $0x1a8] sm:$0x3] }
 0x11f   : > { %v5412_v1 = vadd.f32 %v3862_v33, %v887_v30  ;;  %v882_v24 = vadd.f32 %v881_v35, %v5164_v59  ;;  %v3865_v21 = vpop.f32.mrf.mxu0  ;;  %4164 = vmatmul.mubr.msk.f32.gmra.mxu0 %vm364_vm2, %v5970_v22  ;;  %v6005_v30 = vld [vmem:[#allocation18_spill] sm:$0xff] }
 0x120   : > { %v3815_v45 = vpop.f32.mrf.mxu1  ;;  %4114 = vmatmul.mubr.msk.f32.gmra.mxu1 %vm364_vm2, %v5997_v10  ;;  %4166 = vmatprep.mubr.msk.f32.mxu0 %vm364_vm2, %v4847_v38  ;;  %v6007_v35 = vld [vmem:[#allocation14_spill] sm:$0xff]  ;;  %v6009_v10 = vld [vmem:[#allocation23_spill] sm:$0xff] }
 0x121   : > { %v5421_v39 = vadd.f32 %v1254_v48, %v882_v24  ;;  %v897_v40 = vadd.f32 %v3815_v45, %v5170_v54  ;;  %v1264_v2 = vpop.f32.mrf.mxu0  ;;  %4116 = vmatprep.mubr.msk.f32.mxu1 %vm364_vm2, %v5998_v51 }
 0x122   : > { %v891_v59 = vpop.f32.mrf.mxu1 }
 0x123   : > { %v5426_v55 = vadd.f32 %v3865_v21, %v897_v40  ;;  %v892_v22 = vadd.f32 %v891_v59, %v5180_v7  ;;  %v3868_v23 = vpop.f32.mrf.mxu0  ;;  %4167 = vmatmul.mubr.msk.f32.gmra.mxu0 %vm364_vm2, %v4858_v58  ;;  %v2430_v40 = vrot.slane %v225_v25, 1 }
 0x124   : > { %v3818_v5 = vpop.f32.mrf.mxu1  ;;  %4117 = vmatmul.mubr.msk.f32.gmra.mxu1 %vm364_vm2, %v5999_v60  ;;  %4169 = vmatprep.mubr.msk.f32.mxu0 %vm364_vm2, %v4864_v56  ;;  %v6001_v56 = vld [vmem:[#allocation29_spill] sm:$0xff] }
 0x125   : > { %v5435_v38 = vadd.f32 %v1264_v2, %v892_v22  ;;  %v907_v54 = vadd.f32 %v3818_v5, %v5186_v6  ;;  %v1274_v50 = vpop.f32.mrf.mxu0  ;;  %4119 = vmatprep.mubr.msk.f32.mxu1 %vm364_vm2, %v6000_v44  ;;  %v2696_v6 = vrot.slane %v5231_v36, 2  ;;  %v6012_v44 = vld [vmem:[#allocation4_spill] sm:$0xff] }
 0x126   : > { %v901_v7 = vpop.f32.mrf.mxu1 }
 0x127   : > { %v5440_v0 = vadd.f32 %v3868_v23, %v907_v54  ;;  %v902_v58 = vadd.f32 %v901_v7, %v5196_v18  ;;  %v3871_v52 = vpop.f32.mrf.mxu0  ;;  %4170 = vmatmul.mubr.msk.f32.gmra.mxu0 %vm364_vm2, %v4875_v63  ;;  %v2427_v63 = vrot.slane %v5231_v36, 1  ;;  %v2699_v36 = vrot.slane %v225_v25, 2  ;;  %v6010_v23 = vld [vmem:[#allocation12_spill] sm:$0xff]  ;;  %v6011_v54 = vld [vmem:[#allocation34_spill] sm:$0xff] }
 0x128   : > { %v3821_v19 = vpop.f32.mrf.mxu1  ;;  %4120 = vmatmul.mubr.msk.f32.gmra.mxu1 %vm364_vm2, %v6001_v56  ;;  %4172 = vmatprep.mubr.msk.f32.mxu0 %vm364_vm2, %v4881_v13  ;;  %v6004_v13 = vld [vmem:[#allocation8_spill] sm:$0xff]  ;;  %v2698_v2 = vsel %vm950_vm3, %v2696_v6, %v2697_v31  ;;  %v2431_v6 = vsel %vm283_vm1, %v2428_v53, %v2430_v40 }
 0x129   : > { %v5451_v47 = vadd.f32 %v1274_v50, %v902_v58  ;;  %v917_v41 = vadd.f32 %v3821_v19, %v6002_v29  ;;  %v1284_v18 = vpop.f32.mrf.mxu0  ;;  %4122 = vmatprep.mubr.msk.f32.mxu1 %vm364_vm2, %v6003_v16  ;;  %v2429_v59 = vsel %vm283_vm1, %v2427_v63, %v2428_v53  ;;  %v2700_v7 = vsel %vm950_vm3, %v2697_v31, %v2699_v36  ;;  %v6015_v25 = vld [vmem:[#allocation36_spill] sm:$0xff]  ;;  %v6016_v53 = vld [vmem:[#allocation37_spill] sm:$0xff] }
 0x12a   : > { %v911_v15 = vpop.f32.mrf.mxu1 }
 0x12b   : > { %v5459_v33 = vadd.f32 %v3871_v52, %v917_v41  ;;  %v912_v4 = vadd.f32 %v911_v15, %v6004_v13  ;;  %v3874_v11 = vpop.f32.mrf.mxu0  ;;  %4173 = vmatmul.mubr.msk.f32.gmra.mxu0 %vm364_vm2, %v6005_v30  ;;  %v6013_v52 = vld [vmem:[#allocation19_spill] sm:$0xff] }
 0x12c   : > { %v3824_v48 = vpop.f32.mrf.mxu1  ;;  %4123 = vmatmul.mubr.msk.f32.gmra.mxu1 %vm364_vm2, %v6006_v14  ;;  %4175 = vmatprep.mubr.msk.f32.mxu0 %vm364_vm2, %v6007_v35 }
 0x12d   : > { %v5468_v24 = vadd.f32 %v1284_v18, %v912_v4  ;;  %v927_v21 = vadd.f32 %v3824_v48, %v6008_v32  ;;  %v1294_v45 = vpop.f32.mrf.mxu0  ;;  %4125 = vmatprep.mubr.msk.f32.mxu1 %vm364_vm2, %v6009_v10  ;;  %v6014_v18 = vld [vmem:[#allocation35_spill] sm:$0xff] }
 0x12e   : > { %v921_v51 = vpop.f32.mrf.mxu1 }
 0x12f   : > { %v5475_v22 = vadd.f32 %v3874_v11, %v927_v21  ;;  %v922_v5 = vadd.f32 %v921_v51, %v6010_v23  ;;  %v3877_v60 = vpop.f32.mrf.mxu0  ;;  %4176 = vmatmul.mubr.msk.f32.gmra.mxu0 %vm364_vm2, %v6011_v54 }
 0x130   : > { %v3827_v50 = vpop.f32.mrf.mxu1  ;;  %4126 = vmatmul.mubr.msk.f32.gmra.mxu1 %vm364_vm2, %v6012_v44  ;;  %4178 = vmatprep.mubr.msk.f32.mxu0 %vm364_vm2, %v2698_v2 }
 0x131   : > { %v5484_v58 = vadd.f32 %v1294_v45, %v922_v5  ;;  %v937_v19 = vadd.f32 %v3827_v50, %v6013_v52  ;;  %v1304_v56 = vpop.f32.mrf.mxu0  ;;  %4128 = vmatprep.mubr.msk.f32.mxu1 %vm364_vm2, %v2429_v59 }
 0x132   : > { %v931_v29 = vpop.f32.mrf.mxu1 }
 0x133   : > { %v5489_v41 = vadd.f32 %v3877_v60, %v937_v19  ;;  %v932_v16 = vadd.f32 %v931_v29, %v6014_v18  ;;  %v3880_v63 = vpop.f32.mrf.mxu0  ;;  %4179 = vmatmul.mubr.msk.f32.gmra.mxu0 %vm364_vm2, %v2700_v7 }
 0x134   : > { %v3830_v15 = vpop.f32.mrf.mxu1  ;;  %4129 = vmatmul.mubr.msk.f32.gmra.mxu1 %vm364_vm2, %v2431_v6 }
 0x135   : > { %v5494_v31 = vadd.f32 %v1304_v56, %v932_v16  ;;  %v947_v13 = vadd.f32 %v3830_v15, %v6015_v25  ;;  %v1314_v4 = vpop.f32.mrf.mxu0 }
 0x136   : > { %v941_v11 = vpop.f32.mrf.mxu1 }
 0x137   : > { %v5497_v30 = vadd.f32 %v3880_v63, %v947_v13  ;;  %v942_v48 = vadd.f32 %v941_v11, %v6016_v53  ;;  %v3935_v14 = vpop.f32.mrf.mxu0 }
 0x138   : > { %v3885_v35 = vpop.f32.mrf.mxu1 }
 0x139   : > { %v5500_v36 = vadd.f32 %v1314_v4, %v942_v48  ;;  %v1590_v32 = vadd.f32 %v3885_v35, %v5286_v57  ;;  %v1700_v21 = vpop.f32.mrf.mxu0 }
 0x13a   : > { %v1430_v45 = vpop.f32.mrf.mxu1 }
 0x13b   : > { %v5503_v10 = vadd.f32 %v3935_v14, %v1590_v32  ;;  %v1589_v40 = vadd.f32 %v1430_v45, %v5295_v43  ;;  %v3938_v2 = vpop.f32.mrf.mxu0 }
 0x13c   : > { %v3888_v51 = vpop.f32.mrf.mxu1 }
 0x13d   : > { %v5506_v59 = vadd.f32 %v1700_v21, %v1589_v40  ;;  %v1592_v23 = vadd.f32 %v3888_v51, %v5300_v20  ;;  %v1710_v5 = vpop.f32.mrf.mxu0 }
 0x13e   : > { %v1440_v60 = vpop.f32.mrf.mxu1 }
 0x13f   : > { %v5509_v54 = vadd.f32 %v3938_v2, %v1592_v23  ;;  %v1591_v50 = vadd.f32 %v1440_v60, %v5309_v49  ;;  %v3941_v44 = vpop.f32.mrf.mxu0 }
 0x140   : > { %v3891_v57 = vpop.f32.mrf.mxu1 }
 0x141   : > { %v5512_v7 = vadd.f32 %v1710_v5, %v1591_v50  ;;  %v1594_v52 = vadd.f32 %v3891_v57, %v5314_v27  ;;  %v1720_v19 = vpop.f32.mrf.mxu0 }
 0x142   : > { %v1450_v43 = vpop.f32.mrf.mxu1 }
 0x143   : > { %v5515_v56 = vadd.f32 %v3941_v44, %v1594_v52  ;;  %v1593_v6 = vadd.f32 %v1450_v43, %v5323_v12  ;;  %v3944_v29 = vpop.f32.mrf.mxu0 }
 0x144   : > { %v3894_v20 = vpop.f32.mrf.mxu1 }
 0x145   : > { %v5518_v18 = vadd.f32 %v1720_v19, %v1593_v6  ;;  %v1596_v16 = vadd.f32 %v3894_v20, %v5328_v17  ;;  %v1730_v63 = vpop.f32.mrf.mxu0 }
 0x146   : > { %v1460_v49 = vpop.f32.mrf.mxu1 }
 0x147   : > { %v5521_v15 = vadd.f32 %v3944_v29, %v1596_v16  ;;  %v1595_v25 = vadd.f32 %v1460_v49, %v5337_v37  ;;  %v3947_v13 = vpop.f32.mrf.mxu0 }
 0x148   : > { %v3897_v27 = vpop.f32.mrf.mxu1 }
 0x149   : > { %v5524_v4 = vadd.f32 %v1730_v63, %v1595_v25  ;;  %v1598_v11 = vadd.f32 %v3897_v27, %v5342_v61  ;;  %v1740_v53 = vpop.f32.mrf.mxu0 }
 0x14a   : > { %v1470_v12 = vpop.f32.mrf.mxu1 }
 0x14b   : > { %v5527_v48 = vadd.f32 %v3947_v13, %v1598_v11  ;;  %v1597_v14 = vadd.f32 %v1470_v12, %v5351_v28  ;;  %v3950_v35 = vpop.f32.mrf.mxu0 }
 0x14c   : > { %v3900_v17 = vpop.f32.mrf.mxu1 }
 0x14d   : > { %v5530_v32 = vadd.f32 %v1740_v53, %v1597_v14  ;;  %v1600_v21 = vadd.f32 %v3900_v17, %v5356_v46  ;;  %v1750_v45 = vpop.f32.mrf.mxu0 }
 0x14e   : > { %v1480_v37 = vpop.f32.mrf.mxu1 }
 0x14f   : > { %v5533_v40 = vadd.f32 %v3950_v35, %v1600_v21  ;;  %v1599_v2 = vadd.f32 %v1480_v37, %v5365_v62  ;;  %v3953_v51 = vpop.f32.mrf.mxu0 }
 0x150   : > { %v3903_v61 = vpop.f32.mrf.mxu1 }
 0x151   : > { %v5536_v23 = vadd.f32 %v1750_v45, %v1599_v2  ;;  %v1602_v5 = vadd.f32 %v3903_v61, %v5370_v34  ;;  %v1760_v60 = vpop.f32.mrf.mxu0 }
 0x152   : > { %v1490_v28 = vpop.f32.mrf.mxu1 }
 0x153   : > { %v5539_v50 = vadd.f32 %v3953_v51, %v1602_v5  ;;  %v1601_v44 = vadd.f32 %v1490_v28, %v5379_v26  ;;  %v3956_v57 = vpop.f32.mrf.mxu0 }
 0x154   : > { %v3906_v46 = vpop.f32.mrf.mxu1 }
 0x155   : > { %v5542_v52 = vadd.f32 %v1760_v60, %v1601_v44  ;;  %v1604_v19 = vadd.f32 %v3906_v46, %v5384_v9  ;;  %v1770_v43 = vpop.f32.mrf.mxu0 }
 0x156   : > { %v1500_v62 = vpop.f32.mrf.mxu1 }
 0x157   : > { %v5545_v6 = vadd.f32 %v3956_v57, %v1604_v19  ;;  %v1603_v29 = vadd.f32 %v1500_v62, %v5393_v42  ;;  %v3959_v20 = vpop.f32.mrf.mxu0 }
 0x158   : > { %v3909_v34 = vpop.f32.mrf.mxu1 }
 0x159   : > { %v5548_v16 = vadd.f32 %v1770_v43, %v1603_v29  ;;  %v1606_v63 = vadd.f32 %v3909_v34, %v5398_v3  ;;  %v1780_v49 = vpop.f32.mrf.mxu0 }
 0x15a   : > { %v1510_v26 = vpop.f32.mrf.mxu1 }
 0x15b   : > { %v5551_v25 = vadd.f32 %v3959_v20, %v1606_v63  ;;  %v1605_v13 = vadd.f32 %v1510_v26, %v5407_v8  ;;  %v3962_v27 = vpop.f32.mrf.mxu0 }
 0x15c   : > { %v3912_v9 = vpop.f32.mrf.mxu1 }
 0x15d   : > { %v5554_v11 = vadd.f32 %v1780_v49, %v1605_v13  ;;  %v1608_v53 = vadd.f32 %v3912_v9, %v5412_v1  ;;  %v1790_v12 = vpop.f32.mrf.mxu0 }
 0x15e   : > { %v1520_v42 = vpop.f32.mrf.mxu1 }
 0x15f   : > { %v5557_v14 = vadd.f32 %v3962_v27, %v1608_v53  ;;  %v1607_v35 = vadd.f32 %v1520_v42, %v5421_v39  ;;  %v3965_v17 = vpop.f32.mrf.mxu0 }
 0x160   : > { %v3915_v3 = vpop.f32.mrf.mxu1 }
 0x161   : > { %v5560_v21 = vadd.f32 %v1790_v12, %v1607_v35  ;;  %v1610_v45 = vadd.f32 %v3915_v3, %v5426_v55  ;;  %v1800_v37 = vpop.f32.mrf.mxu0 }
 0x162   : > { %v1530_v8 = vpop.f32.mrf.mxu1 }
 0x163   : > { %v5563_v2 = vadd.f32 %v3965_v17, %v1610_v45  ;;  %v1609_v51 = vadd.f32 %v1530_v8, %v5435_v38  ;;  %v3968_v61 = vpop.f32.mrf.mxu0 }
 0x164   : > { %v3918_v1 = vpop.f32.mrf.mxu1 }
 0x165   : > { %v5566_v5 = vadd.f32 %v1800_v37, %v1609_v51  ;;  %v1612_v60 = vadd.f32 %v3918_v1, %v5440_v0  ;;  %v1810_v28 = vpop.f32.mrf.mxu0 }
 0x166   : > { %v1540_v39 = vpop.f32.mrf.mxu1 }
 0x167   : > { %v5569_v44 = vadd.f32 %v3968_v61, %v1612_v60  ;;  %v1611_v57 = vadd.f32 %v1540_v39, %v5451_v47  ;;  %v3971_v46 = vpop.f32.mrf.mxu0 }
 0x168   : > { %v3921_v55 = vpop.f32.mrf.mxu1 }
 0x169   : > { %v5572_v19 = vadd.f32 %v1810_v28, %v1611_v57  ;;  %v1614_v43 = vadd.f32 %v3921_v55, %v5459_v33  ;;  %v1820_v62 = vpop.f32.mrf.mxu0 }
 0x16a   : > { %v1550_v38 = vpop.f32.mrf.mxu1 }
 0x16b   : > { %v5575_v29 = vadd.f32 %v3971_v46, %v1614_v43  ;;  %v1613_v20 = vadd.f32 %v1550_v38, %v5468_v24  ;;  %v3974_v34 = vpop.f32.mrf.mxu0 }
 0x16c   : > { %v3924_v0 = vpop.f32.mrf.mxu1 }
 0x16d   : > { %v5578_v63 = vadd.f32 %v1820_v62, %v1613_v20  ;;  %v1616_v49 = vadd.f32 %v3924_v0, %v5475_v22  ;;  %v1830_v26 = vpop.f32.mrf.mxu0 }
 0x16e   : > { %v1560_v47 = vpop.f32.mrf.mxu1 }
 0x16f   : > { %v5581_v13 = vadd.f32 %v3974_v34, %v1616_v49  ;;  %v1615_v27 = vadd.f32 %v1560_v47, %v5484_v58  ;;  %v3977_v9 = vpop.f32.mrf.mxu0 }
 0x170   : > { %v3927_v33 = vpop.f32.mrf.mxu1 }
 0x171   : > { %v5584_v53 = vadd.f32 %v1830_v26, %v1615_v27  ;;  %v1618_v12 = vadd.f32 %v3927_v33, %v5489_v41  ;;  %v1840_v42 = vpop.f32.mrf.mxu0 }
 0x172   : > { %v1570_v24 = vpop.f32.mrf.mxu1 }
 0x173   : > { %v5587_v35 = vadd.f32 %v3977_v9, %v1618_v12  ;;  %v1617_v17 = vadd.f32 %v1570_v24, %v5494_v31  ;;  %v3980_v3 = vpop.f32.mrf.mxu0 }
 0x174   : > { %v3930_v22 = vpop.f32.mrf.mxu1 }
 0x175   : > { %v5590_v45 = vadd.f32 %v1840_v42, %v1617_v17  ;;  %v1620_v37 = vadd.f32 %v3930_v22, %v5497_v30  ;;  %v1850_v8 = vpop.f32.mrf.mxu0 }
 0x176   : > { %v1580_v58 = vpop.f32.mrf.mxu1 }
 0x177   : > { %v5593_v51 = vadd.f32 %v3980_v3, %v1620_v37  ;;  %v1619_v61 = vadd.f32 %v1580_v58, %v5500_v36  ;;  %v4035_v1 = vpop.f32.mrf.mxu0 }
 0x178   : > { %v3985_v41 = vpop.f32.mrf.mxu1 }
 0x179   : > { %v5596_v60 = vadd.f32 %v1850_v8, %v1619_v61  ;;  %v2129_v28 = vadd.f32 %v3985_v41, %v5503_v10  ;;  %v5599_v39 = vpop.f32.mrf.mxu0 }
 0x17a   : > { %v5601_v31 = vpop.f32.mrf.mxu1 }
 0x17b   : > { %v5603_v57 = vadd.f32 %v4035_v1, %v2129_v28  ;;  %v4038_v46 = vpop.f32.mrf.mxu0 }
 0x17c   : > { %v3988_v30 = vpop.f32.mrf.mxu1 }
 0x17d   : > { %v2131_v55 = vadd.f32 %v3988_v30, %v5509_v54  ;;  %v2245_v43 = vpop.f32.mrf.mxu0 }
 0x17e   : > { %v1979_v62 = vpop.f32.mrf.mxu1 }
 0x17f   : > { %v5606_v38 = vadd.f32 %v4038_v46, %v2131_v55  ;;  %v2130_v36 = vadd.f32 %v1979_v62, %v5512_v7  ;;  %v4041_v20 = vpop.f32.mrf.mxu0 }
 0x180   : > { %v3991_v34 = vpop.f32.mrf.mxu1 }
 0x181   : > { %v5609_v0 = vadd.f32 %v2245_v43, %v2130_v36  ;;  %v2133_v10 = vadd.f32 %v3991_v34, %v5515_v56  ;;  %v2255_v49 = vpop.f32.mrf.mxu0 }
 0x182   : > { %v1989_v26 = vpop.f32.mrf.mxu1 }
 0x183   : > { %v5612_v47 = vadd.f32 %v4041_v20, %v2133_v10  ;;  %v2132_v27 = vadd.f32 %v1989_v26, %v5518_v18  ;;  %v4044_v9 = vpop.f32.mrf.mxu0 }
 0x184   : > { %v3994_v54 = vpop.f32.mrf.mxu1 }
 0x185   : > { %v5615_v33 = vadd.f32 %v2255_v49, %v2132_v27  ;;  %v2135_v12 = vadd.f32 %v3994_v54, %v5521_v15  ;;  %v2265_v42 = vpop.f32.mrf.mxu0 }
 0x186   : > { %v1999_v7 = vpop.f32.mrf.mxu1 }
 0x187   : > { %v5618_v24 = vadd.f32 %v4044_v9, %v2135_v12  ;;  %v2134_v17 = vadd.f32 %v1999_v7, %v5524_v4  ;;  %v4047_v3 = vpop.f32.mrf.mxu0 }
 0x188   : > { %v3997_v56 = vpop.f32.mrf.mxu1 }
 0x189   : > { %v5621_v22 = vadd.f32 %v2265_v42, %v2134_v17  ;;  %v2137_v37 = vadd.f32 %v3997_v56, %v5527_v48  ;;  %v2275_v8 = vpop.f32.mrf.mxu0 }
 0x18a   : > { %v2009_v18 = vpop.f32.mrf.mxu1 }
 0x18b   : > { %v5624_v58 = vadd.f32 %v4047_v3, %v2137_v37  ;;  %v2136_v61 = vadd.f32 %v2009_v18, %v5530_v32  ;;  %v4050_v1 = vpop.f32.mrf.mxu0 }
 0x18c   : > { %v4000_v15 = vpop.f32.mrf.mxu1 }
 0x18d   : > { %v5627_v41 = vadd.f32 %v2275_v8, %v2136_v61  ;;  %v2139_v28 = vadd.f32 %v4000_v15, %v5533_v40  ;;  %v2285_v46 = vpop.f32.mrf.mxu0 }
 0x18e   : > { %v2019_v4 = vpop.f32.mrf.mxu1 }
 0x18f   : > { %v5630_v30 = vadd.f32 %v4050_v1, %v2139_v28  ;;  %v2138_v55 = vadd.f32 %v2019_v4, %v5536_v23  ;;  %v4053_v43 = vpop.f32.mrf.mxu0 }
 0x190   : > { %v4003_v48 = vpop.f32.mrf.mxu1 }
 0x191   : > { %v5633_v62 = vadd.f32 %v2285_v46, %v2138_v55  ;;  %v2141_v36 = vadd.f32 %v4003_v48, %v5539_v50  ;;  %v2295_v20 = vpop.f32.mrf.mxu0 }
 0x192   : > { %v2029_v32 = vpop.f32.mrf.mxu1 }
 0x193   : > { %v5636_v34 = vadd.f32 %v4053_v43, %v2141_v36  ;;  %v2140_v10 = vadd.f32 %v2029_v32, %v5542_v52  ;;  %v4056_v49 = vpop.f32.mrf.mxu0 }
 0x194   : > { %v4006_v40 = vpop.f32.mrf.mxu1 }
 0x195   : > { %v5639_v26 = vadd.f32 %v2295_v20, %v2140_v10  ;;  %v2143_v27 = vadd.f32 %v4006_v40, %v5545_v6  ;;  %v2305_v9 = vpop.f32.mrf.mxu0 }
 0x196   : > { %v2039_v23 = vpop.f32.mrf.mxu1 }
 0x197   : > { %v5642_v54 = vadd.f32 %v4056_v49, %v2143_v27  ;;  %v2142_v12 = vadd.f32 %v2039_v23, %v5548_v16  ;;  %v4059_v42 = vpop.f32.mrf.mxu0 }
 0x198   : > { %v4009_v50 = vpop.f32.mrf.mxu1 }
 0x199   : > { %v5645_v7 = vadd.f32 %v2305_v9, %v2142_v12  ;;  %v2145_v17 = vadd.f32 %v4009_v50, %v5551_v25  ;;  %v5648_v3 = vpop.f32.mrf.mxu0 }
 0x19a   : > { %v5650_v52 = vpop.f32.mrf.mxu1 }
 0x19b   : > { %v5652_v56 = vadd.f32 %v4059_v42, %v2145_v17  ;;  %v4062_v37 = vpop.f32.mrf.mxu0 }
 0x19c   : > { %v4012_v6 = vpop.f32.mrf.mxu1 }
 0x19d   : > { %v2147_v8 = vadd.f32 %v4012_v6, %v5557_v14  ;;  %v2325_v18 = vpop.f32.mrf.mxu0 }
 0x19e   : > { %v2059_v61 = vpop.f32.mrf.mxu1 }
 0x19f   : > { %v5655_v1 = vadd.f32 %v4062_v37, %v2147_v8  ;;  %v2146_v16 = vadd.f32 %v2059_v61, %v5560_v21  ;;  %v4065_v15 = vpop.f32.mrf.mxu0 }
 0x1a0   : > { %v4015_v28 = vpop.f32.mrf.mxu1 }
 0x1a1   : > { %v5658_v46 = vadd.f32 %v2325_v18, %v2146_v16  ;;  %v2149_v25 = vadd.f32 %v4015_v28, %v5563_v2  ;;  %v2335_v4 = vpop.f32.mrf.mxu0 }
 0x1a2   : > { %v2069_v55 = vpop.f32.mrf.mxu1 }
 0x1a3   : > { %v5661_v43 = vadd.f32 %v4065_v15, %v2149_v25  ;;  %v2148_v48 = vadd.f32 %v2069_v55, %v5566_v5  ;;  %v4068_v36 = vpop.f32.mrf.mxu0 }
 0x1a4   : > { %v4018_v14 = vpop.f32.mrf.mxu1 }
 0x1a5   : > { %v5664_v20 = vadd.f32 %v2335_v4, %v2148_v48  ;;  %v2151_v32 = vadd.f32 %v4018_v14, %v5569_v44  ;;  %v2345_v10 = vpop.f32.mrf.mxu0 }
 0x1a6   : > { %v2079_v21 = vpop.f32.mrf.mxu1 }
 0x1a7   : > { %v5667_v49 = vadd.f32 %v4068_v36, %v2151_v32  ;;  %v2150_v40 = vadd.f32 %v2079_v21, %v5572_v19  ;;  %v4071_v27 = vpop.f32.mrf.mxu0  ;;  %v2128_v36 = vadd.f32 %v5601_v31, %v5506_v59 }
 0x1a8   : > { %v4021_v2 = vpop.f32.mrf.mxu1 }
 0x1a9   : > { %v5670_v9 = vadd.f32 %v2345_v10, %v2150_v40  ;;  %v2153_v23 = vadd.f32 %v4021_v2, %v5575_v29  ;;  %v2355_v12 = vpop.f32.mrf.mxu0  ;;  %v2394_v2 = vadd.f32 %v5599_v39, %v2128_v36 }
 0x1aa   : > { %v2089_v5 = vpop.f32.mrf.mxu1 }
 0x1ab   : > { %v5673_v42 = vadd.f32 %v4071_v27, %v2153_v23  ;;  %v2152_v50 = vadd.f32 %v2089_v5, %v5578_v63  ;;  %v4074_v17 = vpop.f32.mrf.mxu0 }
 0x1ac   : > { %v4024_v44 = vpop.f32.mrf.mxu1 }
 0x1ad   : > { %v5676_v37 = vadd.f32 %v2355_v12, %v2152_v50  ;;  %v2155_v6 = vadd.f32 %v4024_v44, %v5581_v13  ;;  %v2365_v8 = vpop.f32.mrf.mxu0 }
 0x1ae   : > { %v2099_v19 = vpop.f32.mrf.mxu1 }
 0x1af   : > { %v5679_v18 = vadd.f32 %v4074_v17, %v2155_v6  ;;  %v2154_v61 = vadd.f32 %v2099_v19, %v5584_v53  ;;  %v4077_v16 = vpop.f32.mrf.mxu0 }
 0x1b0   : > { %v4027_v29 = vpop.f32.mrf.mxu1 }
 0x1b1   : > { %v5682_v15 = vadd.f32 %v2365_v8, %v2154_v61  ;;  %v2157_v28 = vadd.f32 %v4027_v29, %v5587_v35  ;;  %v2375_v25 = vpop.f32.mrf.mxu0 }
 0x1b2   : > { %v2109_v63 = vpop.f32.mrf.mxu1 }
 0x1b3   : > { %v5685_v4 = vadd.f32 %v4077_v16, %v2157_v28  ;;  %v2156_v55 = vadd.f32 %v2109_v63, %v5590_v45  ;;  %v4080_v48 = vpop.f32.mrf.mxu0 }
 0x1b4   : > { %v4030_v13 = vpop.f32.mrf.mxu1 }
 0x1b5   : > { %v5690_v14 = vadd.f32 %v2375_v25, %v2156_v55  ;;  %v2159_v53 = vadd.f32 %v4030_v13, %v5593_v51  ;;  %v2385_v32 = vpop.f32.mrf.mxu0 }
 0x1b6   : > { %v2119_v10 = vpop.f32.mrf.mxu1 }
 0x1b7   : > { %v5693_v21 = vadd.f32 %v4080_v48, %v2159_v53  ;;  %v2158_v35 = vadd.f32 %v2119_v10, %v5596_v60  ;;  %v4135_v40 = vpop.f32.mrf.mxu0  ;;  %v5703_v60 = vld [vmem:[%s5805_s2] ss:$0 sm:$0xff] }
 0x1b8   : > { %v4085_v27 = vpop.f32.mrf.mxu1 }
 0x1b9   : > { %v5697_v45 = vadd.f32 %v2385_v32, %v2158_v35  ;;  %v2774_v23 = vpop.f32.mrf.mxu0  ;;  %v2665_v59 = vadd.f32 %v4085_v27, %v5603_v57 }
 0x1ba   : > { %v2505_v12 = vpop.f32.mrf.mxu1 }
 0x1bb   : > { %v2664_v31 = vadd.f32 %v2505_v12, %v2394_v2  ;;  %v4138_v5 = vpop.f32.mrf.mxu0  ;;  %v2934_v6 = vadd.f32 %v4135_v40, %v2665_v59 }
 0x1bc   : > { %v4088_v50 = vpop.f32.mrf.mxu1 }
 0x1bd   : > { %v2933_v51 = vadd.f32 %v2774_v23, %v2664_v31  ;;  %v2784_v17 = vpop.f32.mrf.mxu0  ;;  %v2667_v29 = vadd.f32 %v4088_v50, %v5606_v38  ;;  %v2973_v63 = vadd.f32 %v5703_v60, %v2934_v6 }
 0x1be   : > { %v2515_v44 = vpop.f32.mrf.mxu1 }
 0x1bf   : > { %v2666_v39 = vadd.f32 %v2515_v44, %v5609_v0  ;;  %v4141_v8 = vpop.f32.mrf.mxu0  ;;  %v2972_v19 = vadd.f32 %v5703_v60, %v2933_v51  ;;  %v2936_v36 = vadd.f32 %v4138_v5, %v2667_v29 }
 0x1c0   : > { %v4091_v61 = vpop.f32.mrf.mxu1 }
 0x1c1   : > { %3004 = vxpose.xlu0.b32.start [1/16] (narrow) %v2972_v19, 8  ;;  %v2794_v57 = vpop.f32.mrf.mxu0  ;;  %v2935_v28 = vadd.f32 %v2784_v17, %v2666_v39  ;;  %v2669_v38 = vadd.f32 %v4091_v61, %v5612_v47  ;;  %v2975_v23 = vadd.f32 %v5703_v60, %v2936_v36 }
 0x1c2   : > { %v2525_v16 = vpop.f32.mrf.mxu1 }
 0x1c3   : > { %v4144_v25 = vpop.f32.mrf.mxu0  ;;  %v2668_v0 = vadd.f32 %v2525_v16, %v5615_v33  ;;  %v2974_v32 = vadd.f32 %v5703_v60, %v2935_v28  ;;  %v2938_v5 = vadd.f32 %v4141_v8, %v2669_v38 }
 0x1c4   : > { %v4094_v55 = vpop.f32.mrf.mxu1 }
 0x1c5   : > { %3005 = vxpose.xlu0.b32.cont [2/16] (narrow) %v2973_v63, 8  ;;  %v2804_v48 = vpop.f32.mrf.mxu0  ;;  %v2937_v27 = vadd.f32 %v2794_v57, %v2668_v0  ;;  %v2671_v6 = vadd.f32 %v4094_v55, %v5618_v24  ;;  %v2977_v61 = vadd.f32 %v5703_v60, %v2938_v5 }
 0x1c6   : > { %v2535_v13 = vpop.f32.mrf.mxu1 }
 0x1c7   : > { %v4147_v53 = vpop.f32.mrf.mxu0  ;;  %v2670_v33 = vadd.f32 %v2535_v13, %v5621_v22  ;;  %v2976_v51 = vadd.f32 %v5703_v60, %v2937_v27  ;;  %v2144_v22 = vadd.f32 %v5650_v52, %v5554_v11  ;;  %v2940_v29 = vadd.f32 %v4144_v25, %v2671_v6 }
 0x1c8   : > { %v4097_v10 = vpop.f32.mrf.mxu1 }
 0x1c9   : > { %3006 = vxpose.xlu0.b32.cont [3/16] (narrow) %v2974_v32, 8  ;;  %v2814_v35 = vpop.f32.mrf.mxu0  ;;  %v2939_v39 = vadd.f32 %v2804_v48, %v2670_v33  ;;  %v2410_v48 = vadd.f32 %v5648_v3, %v2144_v22  ;;  %v2673_v36 = vadd.f32 %v4097_v10, %v5624_v58  ;;  %v2979_v38 = vadd.f32 %v5703_v60, %v2940_v29 }
 0x1ca   : > { %v2545_v40 = vpop.f32.mrf.mxu1 }
 0x1cb   : > { %v5712_v2 = vpop.f32.mrf.mxu0  ;;  %v2672_v28 = vadd.f32 %v2545_v40, %v5627_v41  ;;  %v2978_v24 = vadd.f32 %v5703_v60, %v2939_v39 }
 0x1cc   : > { %v4100_v12 = vpop.f32.mrf.mxu1 }
 0x1cd   : > { %3007 = vxpose.xlu0.b32.cont [4/16] (narrow) %v2975_v23, 8  ;;  %v2824_v59 = vpop.f32.mrf.mxu0  ;;  %v2941_v11 = vadd.f32 %v2814_v35, %v2672_v28  ;;  %v2942_v23 = vadd.f32 %v4147_v53, %v2673_v36  ;;  %v2675_v39 = vadd.f32 %v4100_v12, %v5630_v30 }
 0x1ce   : > { %v2555_v31 = vpop.f32.mrf.mxu1 }
 0x1cf   : > { %v5716_v50 = vpop.f32.mrf.mxu0  ;;  %v2674_v5 = vadd.f32 %v2555_v31, %v5633_v62  ;;  %v2980_v58 = vadd.f32 %v5703_v60, %v2941_v11  ;;  %v2981_v53 = vadd.f32 %v5703_v60, %v2942_v23 }
 0x1d0   : > { %v5719_v17 = vpop.f32.mrf.mxu1 }
 0x1d1   : > { %3008 = vxpose.xlu0.b32.cont [5/16] (narrow) %v2976_v51, 8  ;;  %v5721_v47 = vpop.f32.mrf.mxu0  ;;  %v2943_v22 = vadd.f32 %v2824_v59, %v2674_v5  ;;  %v2677_v36 = vadd.f32 %v5719_v17, %v5636_v34 }
 0x1d2   : > { %v2565_v44 = vpop.f32.mrf.mxu1 }
 0x1d3   : > { %v5724_v19 = vpop.f32.mrf.mxu0  ;;  %v2982_v59 = vadd.f32 %v5703_v60, %v2943_v22  ;;  %v2946_v17 = vadd.f32 %v5716_v50, %v2677_v36 }
 0x1d4   : > { %v5727_v8 = vpop.f32.mrf.mxu1 }
 0x1d5   : > { %3009 = vxpose.xlu0.b32.cont [6/16] (narrow) %v2977_v61, 8  ;;  %v5731_v57 = vpop.f32.mrf.mxu0 }
 0x1d6   : > { %v5733_v16 = vpop.f32.mrf.mxu1 }
 0x1d7   : > { %v4159_v63 = vpop.f32.mrf.mxu0  ;;  %v2678_v23 = vadd.f32 %v5733_v16, %v5645_v7 }
 0x1d8   : > { %v4109_v55 = vpop.f32.mrf.mxu1 }
 0x1d9   : > { %3010 = vxpose.xlu0.b32.cont [7/16] (narrow) %v2978_v24, 8  ;;  %v2854_v13 = vpop.f32.mrf.mxu0  ;;  %v2681_v52 = vadd.f32 %v4109_v55, %v5652_v56  ;;  %v2944_v24 = vadd.f32 %v5712_v2, %v2675_v39  ;;  %v2676_v55 = vadd.f32 %v2565_v44, %v5639_v26 }
 0x1da   : > { %v2585_v0 = vpop.f32.mrf.mxu1 }
 0x1db   : > { %v2680_v32 = vadd.f32 %v2585_v0, %v2410_v48  ;;  %v4162_v25 = vpop.f32.mrf.mxu0  ;;  %v2950_v33 = vadd.f32 %v4159_v63, %v2681_v52  ;;  %v2945_v26 = vadd.f32 %v5721_v47, %v2676_v55 }
 0x1dc   : > { %v4112_v27 = vpop.f32.mrf.mxu1 }
 0x1dd   : > { %v2949_v41 = vadd.f32 %v2854_v13, %v2680_v32  ;;  %3011 = vxpose.xlu0.b32.cont [8/16] (narrow) %v2979_v38, 8  ;;  %v2864_v40 = vpop.f32.mrf.mxu0  ;;  %v2683_v62 = vadd.f32 %v4112_v27, %v5655_v1 }
 0x1de   : > { %v2595_v3 = vpop.f32.mrf.mxu1 }
 0x1df   : > { %v2682_v51 = vadd.f32 %v2595_v3, %v5658_v46  ;;  %v2988_v10 = vadd.f32 %v5703_v60, %v2949_v41  ;;  %v4165_v56 = vpop.f32.mrf.mxu0  ;;  %v2989_v46 = vadd.f32 %v5703_v60, %v2950_v33  ;;  %v2952_v12 = vadd.f32 %v4162_v25, %v2683_v62 }
 0x1e0   : > { %v4115_v35 = vpop.f32.mrf.mxu1  ;;  %v2984_v33 = vadd.f32 %v5703_v60, %v2945_v26 }
 0x1e1   : > { %3012 = vxpose.xlu0.b32.cont [9/16] (narrow) %v2980_v58, 8  ;;  %3036 = vxpose.xlu1.b32.start [1/16] (narrow) %v2988_v10, 8  ;;  %v2874_v6 = vpop.f32.mrf.mxu0  ;;  %v2951_v31 = vadd.f32 %v2864_v40, %v2682_v51  ;;  %v2685_v44 = vadd.f32 %v4115_v35, %v5661_v43  ;;  %v2991_v27 = vadd.f32 %v5703_v60, %v2952_v12 }
 0x1e2   : > { %v2605_v61 = vpop.f32.mrf.mxu1  ;;  %v2679_v35 = vadd.f32 %v5727_v8, %v5642_v54 }
 0x1e3   : > { %v5749_v29 = vpop.f32.mrf.mxu0  ;;  %v2684_v48 = vadd.f32 %v2605_v61, %v5664_v20  ;;  %v2990_v1 = vadd.f32 %v5703_v60, %v2951_v31  ;;  %v2983_v20 = vadd.f32 %v5703_v60, %v2944_v24  ;;  %v2954_v5 = vadd.f32 %v4165_v56, %v2685_v44 }
 0x1e4   : > { %v4118_v28 = vpop.f32.mrf.mxu1 }
 0x1e5   : > { %3013 = vxpose.xlu0.b32.cont [10/16] (narrow) %v2981_v53, 8  ;;  %3037 = vxpose.xlu1.b32.cont [2/16] (narrow) %v2989_v46, 8  ;;  %v2884_v63 = vpop.f32.mrf.mxu0  ;;  %v2953_v32 = vadd.f32 %v2874_v6, %v2684_v48  ;;  %v2687_v39 = vadd.f32 %v4118_v28, %v5667_v49  ;;  %v2985_v53 = vadd.f32 %v5703_v60, %v2946_v17 }
 0x1e6   : > { %v2615_v30 = vpop.f32.mrf.mxu1  ;;  %v2993_v22 = vadd.f32 %v5703_v60, %v2954_v5 }
 0x1e7   : > { %v4171_v13 = vpop.f32.mrf.mxu0  ;;  %v2956_v28 = vadd.f32 %v5749_v29, %v2687_v39 }
 0x1e8   : > { %v4121_v0 = vpop.f32.mrf.mxu1 }
 0x1e9   : > { %v2689_v11 = vadd.f32 %v4121_v0, %v5673_v42  ;;  %3014 = vxpose.xlu0.b32.cont [11/16] (narrow) %v2982_v59, 8  ;;  %3038 = vxpose.xlu1.b32.cont [3/16] (narrow) %v2990_v1, 8  ;;  %v2894_v2 = vpop.f32.mrf.mxu0 }
 0x1ea   : > { %v2625_v52 = vpop.f32.mrf.mxu1 }
 0x1eb   : > { %v2688_v38 = vadd.f32 %v2625_v52, %v5676_v37  ;;  %v2958_v25 = vadd.f32 %v4171_v13, %v2689_v11  ;;  %v4174_v34 = vpop.f32.mrf.mxu0  ;;  %v2686_v37 = vadd.f32 %v2615_v30, %v5670_v9 }
 0x1ec   : > { %v4124_v42 = vpop.f32.mrf.mxu1 }
 0x1ed   : > { %v2691_v41 = vadd.f32 %v4124_v42, %v5679_v18  ;;  %v2957_v40 = vadd.f32 %v2894_v2, %v2688_v38  ;;  %3015 = vxpose.xlu0.b32.cont [12/16] (narrow) %v2983_v20, 8  ;;  %3039 = vxpose.xlu1.b32.cont [4/16] (narrow) %v2991_v27, 8  ;;  %v2904_v47 = vpop.f32.mrf.mxu0  ;;  %v2997_v43 = vadd.f32 %v5703_v60, %v2958_v25 }
 0x1ee   : > { %v2635_v3 = vpop.f32.mrf.mxu1  ;;  %v2992_v18 = vadd.f32 %v5703_v60, %v2953_v32  ;;  %v2955_v62 = vadd.f32 %v2884_v63, %v2686_v37 }
 0x1ef   : > { %v2690_v50 = vadd.f32 %v2635_v3, %v5682_v15  ;;  %v2960_v51 = vadd.f32 %v4174_v34, %v2691_v41  ;;  %v4177_v58 = vpop.f32.mrf.mxu0  ;;  %v2996_v10 = vadd.f32 %v5703_v60, %v2957_v40  ;;  %v2947_v15 = vadd.f32 %v5731_v57, %v2678_v23 }
 0x1f0   : > { %v4127_v6 = vpop.f32.mrf.mxu1  ;;  %v2948_v57 = vadd.f32 %v5724_v19, %v2679_v35  ;;  %v2994_v59 = vadd.f32 %v5703_v60, %v2955_v62  ;;  %v2995_v19 = vadd.f32 %v5703_v60, %v2956_v28 }
 0x1f1   : > { %v2693_v7 = vadd.f32 %v4127_v6, %v5685_v4  ;;  %v2959_v16 = vadd.f32 %v2904_v47, %v2690_v50  ;;  %3016 = vxpose.xlu0.b32.cont [13/16] (narrow) %v2984_v33, 8  ;;  %3040 = vxpose.xlu1.b32.cont [5/16] (narrow) %v2992_v18, 8  ;;  %v2914_v9 = vpop.f32.mrf.mxu0  ;;  %v2999_v56 = vadd.f32 %v5703_v60, %v2960_v51 }
 0x1f2   : > { %v2645_v61 = vpop.f32.mrf.mxu1  ;;  %v2987_v29 = vadd.f32 %v5703_v60, %v2948_v57 }
 0x1f3   : > { %v2692_v54 = vadd.f32 %v2645_v61, %v5690_v14  ;;  %v2962_v8 = vadd.f32 %v4177_v58, %v2693_v7  ;;  %v4180_v4 = vpop.f32.mrf.mxu0  ;;  %v2998_v31 = vadd.f32 %v5703_v60, %v2959_v16  ;;  %v2986_v14 = vadd.f32 %v5703_v60, %v2947_v15 }
 0x1f4   : > { %v4130_v46 = vpop.f32.mrf.mxu1 }
 0x1f5   : > { %v2695_v24 = vadd.f32 %v4130_v46, %v5693_v21  ;;  %v2961_v55 = vadd.f32 %v2914_v9, %v2692_v54  ;;  %3017 = vxpose.xlu0.b32.cont [14/16] (narrow) %v2985_v53, 8  ;;  %3041 = vxpose.xlu1.b32.cont [6/16] (narrow) %v2993_v22, 8  ;;  %v3001_v49 = vadd.f32 %v5703_v60, %v2962_v8  ;;  %v2924_v63 = vpop.f32.mrf.mxu0 }
 0x1f6   : > { %v2655_v30 = vpop.f32.mrf.mxu1 }
 0x1f7   : > { %v2694_v12 = vadd.f32 %v2655_v30, %v5697_v45  ;;  %v2964_v48 = vadd.f32 %v4180_v4, %v2695_v24  ;;  %v3000_v21 = vadd.f32 %v5703_v60, %v2961_v55 }
 0x1f9   : > { %v2963_v1 = vadd.f32 %v2924_v63, %v2694_v12  ;;  %3042 = vxpose.xlu1.b32.cont [7/16] (narrow) %v2994_v59, 8  ;;  %3018 = vxpose.xlu0.b32.cont [15/16] (narrow) %v2986_v14, 8  ;;  %v3003_v13 = vadd.f32 %v5703_v60, %v2964_v48 }
 0x1fb   : > { %v3002_v36 = vadd.f32 %v5703_v60, %v2963_v1 }
 0x1fd   : > { %3043 = vxpose.xlu1.b32.cont [8/16] (narrow) %v2995_v19, 8  ;;  %3019 = vxpose.xlu0.b32.end [16/16] (narrow) %v2987_v29, 8 }
 0x201   : > { %3044 = vxpose.xlu1.b32.cont [9/16] (narrow) %v2996_v10, 8 }
 0x205   : > { %3045 = vxpose.xlu1.b32.cont [10/16] (narrow) %v2997_v43, 8 }
 0x209   : > { %3046 = vxpose.xlu1.b32.cont [11/16] (narrow) %v2998_v31, 8 }
 0x20d   : > { %3047 = vxpose.xlu1.b32.cont [12/16] (narrow) %v2999_v56, 8 }
 0x211   : > { %3048 = vxpose.xlu1.b32.cont [13/16] (narrow) %v3000_v21, 8 }
 0x215   : > { %3049 = vxpose.xlu1.b32.cont [14/16] (narrow) %v3001_v49, 8 }
 0x219   : > { %3050 = vxpose.xlu1.b32.cont [15/16] (narrow) %v3002_v36, 8 }
 0x21d   : > { %3051 = vxpose.xlu1.b32.end [16/16] (narrow) %v3003_v13, 8 }
 0x23d   : > { %v3020_v45 = vpop.trf.xlu0 }
 0x23e   : > { %3068 = vst [vmem:[%s170_s18] sm:$0xff] %v3020_v45 }
 0x25d   : > { %v3052_v60 = vpop.trf.xlu1 }
 0x25e   : > { %3069 = vst [vmem:[%s170_s18 + $0x8] sm:$0xff] %v3052_v60 }
 0x25f PF: > { %s13_s12 = sadd.s32 1, %s4198_s12  }
 0x260   : > { %p10_p5 = scmp.ge.s32.totalorder %s13_s12, 4  }
 0x262   :  { %12 = sbr.rel (!%p10_p5) target bundleno = 1 (0x1), region = 62 }

</bundles_post_ra>
